<compile_context>
chip_gen: v5e
topology: v5e:2x2
jax: 0.10.0
libtpu: 0.0.40
codegen_flags: <defaults>
</compile_context>

<pallas_src>
import functools

import jax
import jax.numpy as jnp
from jax.experimental import pallas as pl
from jax.experimental.pallas import tpu as pltpu


# ----------------------------------------------------------------------------
# Small helpers
# ----------------------------------------------------------------------------
def _round_up(n, m=128):
    return ((n + m - 1) // m) * m


def _pad2(a, rows, cols):
    r, c = a.shape
    return jnp.pad(a, ((0, rows - r), (0, cols - c)))


# ----------------------------------------------------------------------------
# Fused CIC forward kernel
#   inputs : state, next_state, [skill] (unpadded, bf16),
#            state_net params, [skill_net params], pred_net params
#            (weights bf16, layer-1 input rows unpadded, output cols 128-padded;
#             pred W1 split into two row-halves; biases f32)
#   outputs: [query], key   (feature dim padded to a multiple of 128, f32)
# ----------------------------------------------------------------------------
def _cic_kernel(project_skill, *refs):
    if project_skill:
        (st_ref, nst_ref, sk_ref,
         ws1, bs1, ws2, bs2, ws3, bs3,
         wk1, bk1, wk2, bk2, wk3, bk3,
         wp1a, wp1b, bp1, wp2, bp2, wp3, bp3,
         q_ref, k_ref) = refs
    else:
        (st_ref, nst_ref,
         ws1, bs1, ws2, bs2, ws3, bs3,
         wp1a, wp1b, bp1, wp2, bp2, wp3, bp3,
         k_ref) = refs

    def dot(a, w_ref):
        # bf16 x bf16 -> f32 accumulation on the MXU.
        return jnp.dot(a.astype(jnp.bfloat16), w_ref[...],
                       preferred_element_type=jnp.float32)

    def mlp3(x, w1, b1, w2, b2, w3, b3):
        h1 = jnp.maximum(dot(x, w1) + b1[...], 0.0)
        h2 = jnp.maximum(dot(h1, w2) + b2[...], 0.0)
        return dot(h2, w3) + b3[...]

    tb = st_ref.shape[0]
    # One state_net pass over [state ; next_state] stacked along rows:
    # halves the weight pushes / bias-broadcast / ReLU work vs. two passes.
    x = jnp.concatenate([st_ref[...], nst_ref[...]], axis=0)        # (2*tb, obs)
    sn = mlp3(x, ws1, bs1, ws2, bs2, ws3, bs3)                      # (2*tb, skill_p) f32
    s, ns = sn[:tb], sn[tb:]

    # pred_net with the feature-concat eliminated:
    #   concat([s, ns], 1) @ W1 == s @ W1[:skill] + ns @ W1[skill:]
    h1 = jnp.maximum(dot(s, wp1a) + dot(ns, wp1b) + bp1[...], 0.0)
    h2 = jnp.maximum(dot(h1, wp2) + bp2[...], 0.0)
    k_ref[...] = (dot(h2, wp3) + bp3[...]).astype(k_ref.dtype)

    if project_skill:
        q = mlp3(sk_ref[...], wk1, bk1, wk2, bk2, wk3, bk3)
        q_ref[...] = q.astype(q_ref.dtype)


# ----------------------------------------------------------------------------
# Parameter construction (deterministic, in-script; mirrors weight_init:
# orthogonal-ish weights, zero biases)
# TODO(synk): ortho() slices a square QR, so it does not reproduce PyTorch
#             orthogonal_ statistics exactly for rectangular shapes.
# ----------------------------------------------------------------------------
def _init_mlp3(key, din, dout, dh):
    def ortho(k, shape):
        a = jax.random.normal(k, (max(shape), max(shape)), dtype=jnp.float32)
        q, _ = jnp.linalg.qr(a)
        return q[: shape[0], : shape[1]].astype(jnp.float32)

    k1, k2, k3 = jax.random.split(key, 3)
    w1 = ortho(k1, (din, dh))
    w2 = ortho(k2, (dh, dh))
    w3 = ortho(k3, (dh, dout))
    b1 = jnp.zeros((1, dh), jnp.float32)
    b2 = jnp.zeros((1, dh), jnp.float32)
    b3 = jnp.zeros((1, dout), jnp.float32)
    return (w1, b1, w2, b2, w3, b3)


def _mlp3_ref(x, params):
    w1, b1, w2, b2, w3, b3 = params
    h = jnp.maximum(x @ w1 + b1, 0.0)
    h = jnp.maximum(h @ w2 + b2, 0.0)
    return h @ w3 + b3


# ----------------------------------------------------------------------------
# CIC module (Pallas)
# ----------------------------------------------------------------------------
class CICPallas:
    def __init__(self, obs_dim, skill_dim, hidden_dim, project_skill, key,
                 batch_tile=None):
        self.obs_dim = obs_dim
        self.skill_dim = skill_dim
        self.hidden_dim = hidden_dim
        self.project_skill = project_skill
        self.batch_tile = batch_tile

        # Lane-dense padded *output* dims (multiples of 128). 128 (not 256) is kept
        # on purpose: rounding to 256 would inflate the dominant hid x hid layer's
        # FLOPs far more than it saves in half-filled MXU passes.
        self.skill_p = _round_up(skill_dim)
        self.hid_p = _round_up(hidden_dim)

        ks, kn, kp, kk = jax.random.split(key, 4)
        # Logical (unpadded, f32) params — also used by the pure-JAX reference.
        self.state_net = _init_mlp3(ks, obs_dim, skill_dim, hidden_dim)
        self.next_state_net = _init_mlp3(kn, obs_dim, skill_dim, hidden_dim)  # unused in fwd (matches PyTorch)
        self.pred_net = _init_mlp3(kp, 2 * skill_dim, skill_dim, hidden_dim)
        self.skill_net = (_init_mlp3(kk, skill_dim, skill_dim, hidden_dim)
                          if project_skill else None)

        bf16 = jnp.bfloat16
        # Padded kernel params.  Layer-1 weights keep their UNPADDED input rows
        # (the kernel matmuls against the raw activation block), all output dims
        # are zero-padded to multiples of 128.  Weights bf16, biases f32.
        self._state_net_p = self._pad_mlp(self.state_net)
        wp1, bp1, wp2, bp2, wp3, bp3 = self.pred_net
        self._pred_net_p = (
            _pad2(wp1[:skill_dim], self.skill_p, self.hid_p).astype(bf16),  # W1a (acts on s)
            _pad2(wp1[skill_dim:], self.skill_p, self.hid_p).astype(bf16),  # W1b (acts on ns)
            _pad2(bp1, 1, self.hid_p),
            _pad2(wp2, self.hid_p, self.hid_p).astype(bf16),
            _pad2(bp2, 1, self.hid_p),
            _pad2(wp3, self.hid_p, self.skill_p).astype(bf16),
            _pad2(bp3, 1, self.skill_p),
        )
        self._skill_net_p = (self._pad_mlp(self.skill_net)
                             if project_skill else None)

    def _pad_mlp(self, params):
        w1, b1, w2, b2, w3, b3 = params
        bf16 = jnp.bfloat16
        din = w1.shape[0]
        return (
            _pad2(w1, din, self.hid_p).astype(bf16),          # unpadded input rows
            _pad2(b1, 1, self.hid_p),
            _pad2(w2, self.hid_p, self.hid_p).astype(bf16),
            _pad2(b2, 1, self.hid_p),
            _pad2(w3, self.hid_p, self.skill_p).astype(bf16),
            _pad2(b3, 1, self.skill_p),
        )

    def _pick_tile(self, B):
        if self.batch_tile is not None:
            tb = self.batch_tile
            assert B % tb == 0, "batch must be divisible by batch_tile"
            assert tb == B or tb % 8 == 0, "batch_tile must be a multiple of 8"
            return tb
        # Prefer >= 2 grid steps (keeps both v7x TensorCores busy via the
        # "parallel" batch axis) with tiles <= 512 rows, multiple of 8, dividing B.
        # Weights are resident so extra grid steps cost only ~0.35us each;
        # on single-TC v5e/v6e this is harmless (override batch_tile for bigger tiles).
        if B < 16 or B % 8 != 0:
            return B  # single full-batch tile (full-extent block rows are legal)
        cap = min(512, B // 2)
        for tb in range(cap - cap % 8, 7, -8):
            if B % tb == 0:
                return tb
        return B

    def __call__(self, state, next_state, skill):
        assert state.ndim == next_state.ndim
        B = state.shape[0]
        tb = self._pick_tile(B)
        grid = (B // tb,)

        # No wrapper-side padding: just a dtype cast (bf16 matmul operands).
        state_b = state.astype(jnp.bfloat16)
        nstate_b = next_state.astype(jnp.bfloat16)

        act_obs_spec = pl.BlockSpec((tb, self.obs_dim), lambda i: (i, 0))
        act_skill_spec = pl.BlockSpec((tb, self.skill_dim), lambda i: (i, 0))
        out_spec = pl.BlockSpec((tb, self.skill_p), lambda i: (i, 0))

        if self.project_skill:
            skill_b = skill.astype(jnp.bfloat16)
            act_args = (state_b, nstate_b, skill_b)
            act_specs = [act_obs_spec, act_obs_spec, act_skill_spec]
            weight_args = self._state_net_p + self._skill_net_p + self._pred_net_p
            out_shape = (jax.ShapeDtypeStruct((B, self.skill_p), jnp.float32),
                         jax.ShapeDtypeStruct((B, self.skill_p), jnp.float32))
            out_specs = (out_spec, out_spec)
            n_out = 2
        else:
            act_args = (state_b, nstate_b)
            act_specs = [act_obs_spec, act_obs_spec]
            weight_args = self._state_net_p + self._pred_net_p
            out_shape = jax.ShapeDtypeStruct((B, self.skill_p), jnp.float32)
            out_specs = out_spec
            n_out = 1
        args = act_args + weight_args

        # FLOP / byte hints for the XLA scheduler.
        def mlp_flops(din, rows):
            return 2 * rows * (din * self.hid_p
                               + self.hid_p * self.hid_p
                               + self.hid_p * self.skill_p)
        flops = mlp_flops(self.obs_dim, 2 * B) + mlp_flops(2 * self.skill_p, B)
        if self.project_skill:
            flops += mlp_flops(self.skill_dim, B)
        in_bytes = sum(int(a.size) * a.dtype.itemsize for a in args)
        bytes_accessed = in_bytes + n_out * B * self.skill_p * 4

        # VMEM budget: weights (x buffer count) + double-buffered act/out tiles
        # + generous f32 intermediates (stacked s/ns, h1, h2, ...), 2x margin,
        # floored at 32 MiB and capped at 64 MiB (valid on v7x; below 128 MiB v5e/v6e).
        w_bytes = sum(int(a.size) * a.dtype.itemsize for a in weight_args)
        act_tile = sum(int(a.size) * a.dtype.itemsize for a in act_args) // grid[0]
        out_tile = n_out * tb * self.skill_p * 4
        inter = 8 * (2 * tb) * max(self.hid_p, self.skill_p) * 4

        def run(w_bufs):
            # Resident weights (constant (0,0) index map): single-buffer them when
            # the JAX build supports pipeline_mode=pl.Buffered(1); default otherwise.
            pm = pl.Buffered(1) if w_bufs == 1 else None
            w_specs = [pl.BlockSpec(w.shape, lambda i: (0, 0), pipeline_mode=pm)
                       for w in weight_args]
            need = w_bufs * w_bytes + 2 * (act_tile + out_tile) + inter
            vmem_limit = int(min(max(2 * need, 32 << 20), 64 << 20))
            return pl.pallas_call(
                functools.partial(_cic_kernel, self.project_skill),
                out_shape=out_shape,
                grid=grid,
                in_specs=act_specs + w_specs,
                out_specs=out_specs,
                compiler_params=pltpu.CompilerParams(
                    dimension_semantics=("parallel",),
                    vmem_limit_bytes=vmem_limit),
                cost_estimate=pl.CostEstimate(
                    flops=int(flops), transcendentals=0,
                    bytes_accessed=int(bytes_accessed)),
            )(*args)

        try:
            result = run(1)
        except Exception:
            # Fallback: some JAX builds reject Buffered(1); use default 2-deep buffers.
            result = run(2)

        if self.project_skill:
            q_pad, k_pad = result
            return q_pad[:, : self.skill_dim], k_pad[:, : self.skill_dim]
        return skill, result[:, : self.skill_dim]

    # Pure-JAX f32 reference (unpadded params) for correctness checks.
    def reference(self, state, next_state, skill):
        s = _mlp3_ref(state, self.state_net)
        ns = _mlp3_ref(next_state, self.state_net)
        query = _mlp3_ref(skill, self.skill_net) if self.project_skill else skill
        key = _mlp3_ref(jnp.concatenate([s, ns], axis=1), self.pred_net)
        return query, key


if __name__ == "__main__":
    B, OBS, SKILL, HID = 8, 16, 8, 32

    root = jax.random.PRNGKey(0)
    k_params, k_s, k_ns, k_sk = jax.random.split(root, 4)

    cic = CICPallas(OBS, SKILL, HID, project_skill=True, key=k_params)

    state = jax.random.normal(k_s, (B, OBS), dtype=jnp.float32)
    next_state = jax.random.normal(k_ns, (B, OBS), dtype=jnp.float32)
    skill = jax.random.uniform(k_sk, (B, SKILL), dtype=jnp.float32)

    query, key = cic(state, next_state, skill)
    jax.block_until_ready((query, key))

    q_ref, k_ref = cic.reference(state, next_state, skill)
    assert query.shape == (B, SKILL) and key.shape == (B, SKILL)
    # bf16 weights/activations with f32 accumulation -> loosened tolerance.
    assert jnp.allclose(query, q_ref, atol=3e-2, rtol=3e-2)
    assert jnp.allclose(key, k_ref, atol=3e-2, rtol=3e-2)

    print("KERNEL_OK")
</pallas_src>

<mosaic_0001>
module attributes {stable_mosaic.version = 11 : i64} {
  func.func @_cic_kernel(%arg0: i32, %arg1: memref<8x16xbf16, #tpu.memory_space<vmem>>, %arg2: memref<8x16xbf16, #tpu.memory_space<vmem>>, %arg3: memref<8x8xbf16, #tpu.memory_space<vmem>>, %arg4: memref<16x128xbf16, #tpu.memory_space<vmem>>, %arg5: memref<1x128xf32, #tpu.memory_space<vmem>>, %arg6: memref<128x128xbf16, #tpu.memory_space<vmem>>, %arg7: memref<1x128xf32, #tpu.memory_space<vmem>>, %arg8: memref<128x128xbf16, #tpu.memory_space<vmem>>, %arg9: memref<1x128xf32, #tpu.memory_space<vmem>>, %arg10: memref<8x128xbf16, #tpu.memory_space<vmem>>, %arg11: memref<1x128xf32, #tpu.memory_space<vmem>>, %arg12: memref<128x128xbf16, #tpu.memory_space<vmem>>, %arg13: memref<1x128xf32, #tpu.memory_space<vmem>>, %arg14: memref<128x128xbf16, #tpu.memory_space<vmem>>, %arg15: memref<1x128xf32, #tpu.memory_space<vmem>>, %arg16: memref<128x128xbf16, #tpu.memory_space<vmem>>, %arg17: memref<128x128xbf16, #tpu.memory_space<vmem>>, %arg18: memref<1x128xf32, #tpu.memory_space<vmem>>, %arg19: memref<128x128xbf16, #tpu.memory_space<vmem>>, %arg20: memref<1x128xf32, #tpu.memory_space<vmem>>, %arg21: memref<128x128xbf16, #tpu.memory_space<vmem>>, %arg22: memref<1x128xf32, #tpu.memory_space<vmem>>, %arg23: memref<8x128xf32, #tpu.memory_space<vmem>>, %arg24: memref<8x128xf32, #tpu.memory_space<vmem>>) attributes {dimension_semantics = [#tpu.dimension_semantics<parallel>], iteration_bounds = array<i64: 1>, scalar_prefetch = 0 : i64, scratch_operands = 0 : i64, tpu.core_type = #tpu.core_type<tc>, window_params = [{transform_indices = @transform_0, window_bounds = array<i64: 8, 16>}, {transform_indices = @transform_1, window_bounds = array<i64: 8, 16>}, {transform_indices = @transform_2, window_bounds = array<i64: 8, 8>}, {pipeline_mode = #tpu.pipeline_mode<synchronous>, transform_indices = @transform_3, window_bounds = array<i64: 16, 128>}, {pipeline_mode = #tpu.pipeline_mode<synchronous>, transform_indices = @transform_4, window_bounds = array<i64: 1, 128>}, {pipeline_mode = #tpu.pipeline_mode<synchronous>, transform_indices = @transform_5, window_bounds = array<i64: 128, 128>}, {pipeline_mode = #tpu.pipeline_mode<synchronous>, transform_indices = @transform_6, window_bounds = array<i64: 1, 128>}, {pipeline_mode = #tpu.pipeline_mode<synchronous>, transform_indices = @transform_7, window_bounds = array<i64: 128, 128>}, {pipeline_mode = #tpu.pipeline_mode<synchronous>, transform_indices = @transform_8, window_bounds = array<i64: 1, 128>}, {pipeline_mode = #tpu.pipeline_mode<synchronous>, transform_indices = @transform_9, window_bounds = array<i64: 8, 128>}, {pipeline_mode = #tpu.pipeline_mode<synchronous>, transform_indices = @transform_10, window_bounds = array<i64: 1, 128>}, {pipeline_mode = #tpu.pipeline_mode<synchronous>, transform_indices = @transform_11, window_bounds = array<i64: 128, 128>}, {pipeline_mode = #tpu.pipeline_mode<synchronous>, transform_indices = @transform_12, window_bounds = array<i64: 1, 128>}, {pipeline_mode = #tpu.pipeline_mode<synchronous>, transform_indices = @transform_13, window_bounds = array<i64: 128, 128>}, {pipeline_mode = #tpu.pipeline_mode<synchronous>, transform_indices = @transform_14, window_bounds = array<i64: 1, 128>}, {pipeline_mode = #tpu.pipeline_mode<synchronous>, transform_indices = @transform_15, window_bounds = array<i64: 128, 128>}, {pipeline_mode = #tpu.pipeline_mode<synchronous>, transform_indices = @transform_16, window_bounds = array<i64: 128, 128>}, {pipeline_mode = #tpu.pipeline_mode<synchronous>, transform_indices = @transform_17, window_bounds = array<i64: 1, 128>}, {pipeline_mode = #tpu.pipeline_mode<synchronous>, transform_indices = @transform_18, window_bounds = array<i64: 128, 128>}, {pipeline_mode = #tpu.pipeline_mode<synchronous>, transform_indices = @transform_19, window_bounds = array<i64: 1, 128>}, {pipeline_mode = #tpu.pipeline_mode<synchronous>, transform_indices = @transform_20, window_bounds = array<i64: 128, 128>}, {pipeline_mode = #tpu.pipeline_mode<synchronous>, transform_indices = @transform_21, window_bounds = array<i64: 1, 128>}, {transform_indices = @transform_22, window_bounds = array<i64: 8, 128>}, {transform_indices = @transform_23, window_bounds = array<i64: 8, 128>}]} {
    %c0 = arith.constant 0 : index
    %c0_0 = arith.constant 0 : index
    %0 = vector.load %arg1[%c0, %c0_0] : memref<8x16xbf16, #tpu.memory_space<vmem>>, vector<8x16xbf16>
    %c0_1 = arith.constant 0 : index
    %c0_2 = arith.constant 0 : index
    %1 = vector.load %arg2[%c0_1, %c0_2] : memref<8x16xbf16, #tpu.memory_space<vmem>>, vector<8x16xbf16>
    %2 = tpu.concatenate %0, %1 in 0 : vector<8x16xbf16>, vector<8x16xbf16> -> vector<16x16xbf16>
    %c0_3 = arith.constant 0 : index
    %c0_4 = arith.constant 0 : index
    %3 = vector.load %arg4[%c0_3, %c0_4] : memref<16x128xbf16, #tpu.memory_space<vmem>>, vector<16x128xbf16>
    %cst = arith.constant dense<0.000000e+00> : vector<16x128xf32>
    %4 = tpu.matmul %2, %3, %cst {dimension_numbers = #tpu.dot_dimension_numbers<[1], [0], [0], [1], [0, 0, 1, 1], [], []>} : vector<16x16xbf16>, vector<16x128xbf16>, vector<16x128xf32> -> vector<16x128xf32>
    %c0_5 = arith.constant 0 : index
    %c0_6 = arith.constant 0 : index
    %5 = vector.load %arg5[%c0_5, %c0_6] : memref<1x128xf32, #tpu.memory_space<vmem>>, vector<1x128xf32>
    %6 = vector.broadcast %5 : vector<1x128xf32> to vector<16x128xf32>
    %7 = arith.addf %4, %6 : vector<16x128xf32>
    %cst_7 = arith.constant 0.000000e+00 : f32
    %8 = vector.broadcast %cst_7 : f32 to vector<16x128xf32>
    %9 = arith.maximumf %7, %8 : vector<16x128xf32>
    %10 = arith.truncf %9 : vector<16x128xf32> to vector<16x128xbf16>
    %c0_8 = arith.constant 0 : index
    %c0_9 = arith.constant 0 : index
    %11 = vector.load %arg6[%c0_8, %c0_9] : memref<128x128xbf16, #tpu.memory_space<vmem>>, vector<128x128xbf16>
    %cst_10 = arith.constant dense<0.000000e+00> : vector<16x128xf32>
    %12 = tpu.matmul %10, %11, %cst_10 {dimension_numbers = #tpu.dot_dimension_numbers<[1], [0], [0], [1], [0, 0, 1, 1], [], []>} : vector<16x128xbf16>, vector<128x128xbf16>, vector<16x128xf32> -> vector<16x128xf32>
    %c0_11 = arith.constant 0 : index
    %c0_12 = arith.constant 0 : index
    %13 = vector.load %arg7[%c0_11, %c0_12] : memref<1x128xf32, #tpu.memory_space<vmem>>, vector<1x128xf32>
    %14 = vector.broadcast %13 : vector<1x128xf32> to vector<16x128xf32>
    %15 = arith.addf %12, %14 : vector<16x128xf32>
    %cst_13 = arith.constant 0.000000e+00 : f32
    %16 = vector.broadcast %cst_13 : f32 to vector<16x128xf32>
    %17 = arith.maximumf %15, %16 : vector<16x128xf32>
    %18 = arith.truncf %17 : vector<16x128xf32> to vector<16x128xbf16>
    %c0_14 = arith.constant 0 : index
    %c0_15 = arith.constant 0 : index
    %19 = vector.load %arg8[%c0_14, %c0_15] : memref<128x128xbf16, #tpu.memory_space<vmem>>, vector<128x128xbf16>
    %cst_16 = arith.constant dense<0.000000e+00> : vector<16x128xf32>
    %20 = tpu.matmul %18, %19, %cst_16 {dimension_numbers = #tpu.dot_dimension_numbers<[1], [0], [0], [1], [0, 0, 1, 1], [], []>} : vector<16x128xbf16>, vector<128x128xbf16>, vector<16x128xf32> -> vector<16x128xf32>
    %c0_17 = arith.constant 0 : index
    %c0_18 = arith.constant 0 : index
    %21 = vector.load %arg9[%c0_17, %c0_18] : memref<1x128xf32, #tpu.memory_space<vmem>>, vector<1x128xf32>
    %22 = vector.broadcast %21 : vector<1x128xf32> to vector<16x128xf32>
    %23 = arith.addf %20, %22 : vector<16x128xf32>
    %24 = vector.extract_strided_slice %23 {offsets = [0, 0], sizes = [8, 128], strides = [1, 1]} : vector<16x128xf32> to vector<8x128xf32>
    %25 = vector.extract_strided_slice %23 {offsets = [8, 0], sizes = [8, 128], strides = [1, 1]} : vector<16x128xf32> to vector<8x128xf32>
    %26 = arith.truncf %24 : vector<8x128xf32> to vector<8x128xbf16>
    %c0_19 = arith.constant 0 : index
    %c0_20 = arith.constant 0 : index
    %27 = vector.load %arg16[%c0_19, %c0_20] : memref<128x128xbf16, #tpu.memory_space<vmem>>, vector<128x128xbf16>
    %cst_21 = arith.constant dense<0.000000e+00> : vector<8x128xf32>
    %28 = tpu.matmul %26, %27, %cst_21 {dimension_numbers = #tpu.dot_dimension_numbers<[1], [0], [0], [1], [0, 0, 1, 1], [], []>} : vector<8x128xbf16>, vector<128x128xbf16>, vector<8x128xf32> -> vector<8x128xf32>
    %29 = arith.truncf %25 : vector<8x128xf32> to vector<8x128xbf16>
    %c0_22 = arith.constant 0 : index
    %c0_23 = arith.constant 0 : index
    %30 = vector.load %arg17[%c0_22, %c0_23] : memref<128x128xbf16, #tpu.memory_space<vmem>>, vector<128x128xbf16>
    %cst_24 = arith.constant dense<0.000000e+00> : vector<8x128xf32>
    %31 = tpu.matmul %29, %30, %cst_24 {dimension_numbers = #tpu.dot_dimension_numbers<[1], [0], [0], [1], [0, 0, 1, 1], [], []>} : vector<8x128xbf16>, vector<128x128xbf16>, vector<8x128xf32> -> vector<8x128xf32>
    %32 = arith.addf %28, %31 : vector<8x128xf32>
    %c0_25 = arith.constant 0 : index
    %c0_26 = arith.constant 0 : index
    %33 = vector.load %arg18[%c0_25, %c0_26] : memref<1x128xf32, #tpu.memory_space<vmem>>, vector<1x128xf32>
    %34 = vector.broadcast %33 : vector<1x128xf32> to vector<8x128xf32>
    %35 = arith.addf %32, %34 : vector<8x128xf32>
    %cst_27 = arith.constant 0.000000e+00 : f32
    %36 = vector.broadcast %cst_27 : f32 to vector<8x128xf32>
    %37 = arith.maximumf %35, %36 : vector<8x128xf32>
    %38 = arith.truncf %37 : vector<8x128xf32> to vector<8x128xbf16>
    %c0_28 = arith.constant 0 : index
    %c0_29 = arith.constant 0 : index
    %39 = vector.load %arg19[%c0_28, %c0_29] : memref<128x128xbf16, #tpu.memory_space<vmem>>, vector<128x128xbf16>
    %cst_30 = arith.constant dense<0.000000e+00> : vector<8x128xf32>
    %40 = tpu.matmul %38, %39, %cst_30 {dimension_numbers = #tpu.dot_dimension_numbers<[1], [0], [0], [1], [0, 0, 1, 1], [], []>} : vector<8x128xbf16>, vector<128x128xbf16>, vector<8x128xf32> -> vector<8x128xf32>
    %c0_31 = arith.constant 0 : index
    %c0_32 = arith.constant 0 : index
    %41 = vector.load %arg20[%c0_31, %c0_32] : memref<1x128xf32, #tpu.memory_space<vmem>>, vector<1x128xf32>
    %42 = vector.broadcast %41 : vector<1x128xf32> to vector<8x128xf32>
    %43 = arith.addf %40, %42 : vector<8x128xf32>
    %cst_33 = arith.constant 0.000000e+00 : f32
    %44 = vector.broadcast %cst_33 : f32 to vector<8x128xf32>
    %45 = arith.maximumf %43, %44 : vector<8x128xf32>
    %46 = arith.truncf %45 : vector<8x128xf32> to vector<8x128xbf16>
    %c0_34 = arith.constant 0 : index
    %c0_35 = arith.constant 0 : index
    %47 = vector.load %arg21[%c0_34, %c0_35] : memref<128x128xbf16, #tpu.memory_space<vmem>>, vector<128x128xbf16>
    %cst_36 = arith.constant dense<0.000000e+00> : vector<8x128xf32>
    %48 = tpu.matmul %46, %47, %cst_36 {dimension_numbers = #tpu.dot_dimension_numbers<[1], [0], [0], [1], [0, 0, 1, 1], [], []>} : vector<8x128xbf16>, vector<128x128xbf16>, vector<8x128xf32> -> vector<8x128xf32>
    %c0_37 = arith.constant 0 : index
    %c0_38 = arith.constant 0 : index
    %49 = vector.load %arg22[%c0_37, %c0_38] : memref<1x128xf32, #tpu.memory_space<vmem>>, vector<1x128xf32>
    %50 = vector.broadcast %49 : vector<1x128xf32> to vector<8x128xf32>
    %51 = arith.addf %48, %50 : vector<8x128xf32>
    %c0_39 = arith.constant 0 : index
    %c0_40 = arith.constant 0 : index
    %52 = vector.load %arg24[%c0_39, %c0_40] : memref<8x128xf32, #tpu.memory_space<vmem>>, vector<8x128xf32>
    tpu.vector_store %arg24[%c0_39, %c0_40], %51 {strides = array<i32>} : memref<8x128xf32, #tpu.memory_space<vmem>>, vector<8x128xf32>,
    %c0_41 = arith.constant 0 : index
    %c0_42 = arith.constant 0 : index
    %53 = vector.load %arg3[%c0_41, %c0_42] : memref<8x8xbf16, #tpu.memory_space<vmem>>, vector<8x8xbf16>
    %c0_43 = arith.constant 0 : index
    %c0_44 = arith.constant 0 : index
    %54 = vector.load %arg10[%c0_43, %c0_44] : memref<8x128xbf16, #tpu.memory_space<vmem>>, vector<8x128xbf16>
    %cst_45 = arith.constant dense<0.000000e+00> : vector<8x128xf32>
    %55 = tpu.matmul %53, %54, %cst_45 {dimension_numbers = #tpu.dot_dimension_numbers<[1], [0], [0], [1], [0, 0, 1, 1], [], []>} : vector<8x8xbf16>, vector<8x128xbf16>, vector<8x128xf32> -> vector<8x128xf32>
    %c0_46 = arith.constant 0 : index
    %c0_47 = arith.constant 0 : index
    %56 = vector.load %arg11[%c0_46, %c0_47] : memref<1x128xf32, #tpu.memory_space<vmem>>, vector<1x128xf32>
    %57 = vector.broadcast %56 : vector<1x128xf32> to vector<8x128xf32>
    %58 = arith.addf %55, %57 : vector<8x128xf32>
    %cst_48 = arith.constant 0.000000e+00 : f32
    %59 = vector.broadcast %cst_48 : f32 to vector<8x128xf32>
    %60 = arith.maximumf %58, %59 : vector<8x128xf32>
    %61 = arith.truncf %60 : vector<8x128xf32> to vector<8x128xbf16>
    %c0_49 = arith.constant 0 : index
    %c0_50 = arith.constant 0 : index
    %62 = vector.load %arg12[%c0_49, %c0_50] : memref<128x128xbf16, #tpu.memory_space<vmem>>, vector<128x128xbf16>
    %cst_51 = arith.constant dense<0.000000e+00> : vector<8x128xf32>
    %63 = tpu.matmul %61, %62, %cst_51 {dimension_numbers = #tpu.dot_dimension_numbers<[1], [0], [0], [1], [0, 0, 1, 1], [], []>} : vector<8x128xbf16>, vector<128x128xbf16>, vector<8x128xf32> -> vector<8x128xf32>
    %c0_52 = arith.constant 0 : index
    %c0_53 = arith.constant 0 : index
    %64 = vector.load %arg13[%c0_52, %c0_53] : memref<1x128xf32, #tpu.memory_space<vmem>>, vector<1x128xf32>
    %65 = vector.broadcast %64 : vector<1x128xf32> to vector<8x128xf32>
    %66 = arith.addf %63, %65 : vector<8x128xf32>
    %cst_54 = arith.constant 0.000000e+00 : f32
    %67 = vector.broadcast %cst_54 : f32 to vector<8x128xf32>
    %68 = arith.maximumf %66, %67 : vector<8x128xf32>
    %69 = arith.truncf %68 : vector<8x128xf32> to vector<8x128xbf16>
    %c0_55 = arith.constant 0 : index
    %c0_56 = arith.constant 0 : index
    %70 = vector.load %arg14[%c0_55, %c0_56] : memref<128x128xbf16, #tpu.memory_space<vmem>>, vector<128x128xbf16>
    %cst_57 = arith.constant dense<0.000000e+00> : vector<8x128xf32>
    %71 = tpu.matmul %69, %70, %cst_57 {dimension_numbers = #tpu.dot_dimension_numbers<[1], [0], [0], [1], [0, 0, 1, 1], [], []>} : vector<8x128xbf16>, vector<128x128xbf16>, vector<8x128xf32> -> vector<8x128xf32>
    %c0_58 = arith.constant 0 : index
    %c0_59 = arith.constant 0 : index
    %72 = vector.load %arg15[%c0_58, %c0_59] : memref<1x128xf32, #tpu.memory_space<vmem>>, vector<1x128xf32>
    %73 = vector.broadcast %72 : vector<1x128xf32> to vector<8x128xf32>
    %74 = arith.addf %71, %73 : vector<8x128xf32>
    %c0_60 = arith.constant 0 : index
    %c0_61 = arith.constant 0 : index
    %75 = vector.load %arg23[%c0_60, %c0_61] : memref<8x128xf32, #tpu.memory_space<vmem>>, vector<8x128xf32>
    tpu.vector_store %arg23[%c0_60, %c0_61], %74 {strides = array<i32>} : memref<8x128xf32, #tpu.memory_space<vmem>>, vector<8x128xf32>,
    return
  }
  func.func @transform_0(%arg0: i32) -> (i32, i32) {
    %c0_i32 = arith.constant 0 : i32
    %c0_i32_0 = arith.constant 0 : i32
    return %arg0, %c0_i32 : i32, i32
  }
  func.func @transform_1(%arg0: i32) -> (i32, i32) {
    %c0_i32 = arith.constant 0 : i32
    %c0_i32_0 = arith.constant 0 : i32
    return %arg0, %c0_i32 : i32, i32
  }
  func.func @transform_2(%arg0: i32) -> (i32, i32) {
    %c0_i32 = arith.constant 0 : i32
    %c0_i32_0 = arith.constant 0 : i32
    return %arg0, %c0_i32 : i32, i32
  }
  func.func @transform_3(%arg0: i32) -> (i32, i32) {
    %c0_i32 = arith.constant 0 : i32
    %c0_i32_0 = arith.constant 0 : i32
    %c0_i32_1 = arith.constant 0 : i32
    return %c0_i32, %c0_i32_0 : i32, i32
  }
  func.func @transform_4(%arg0: i32) -> (i32, i32) {
    %c0_i32 = arith.constant 0 : i32
    %c0_i32_0 = arith.constant 0 : i32
    %c0_i32_1 = arith.constant 0 : i32
    return %c0_i32, %c0_i32_0 : i32, i32
  }
  func.func @transform_5(%arg0: i32) -> (i32, i32) {
    %c0_i32 = arith.constant 0 : i32
    %c0_i32_0 = arith.constant 0 : i32
    %c0_i32_1 = arith.constant 0 : i32
    return %c0_i32, %c0_i32_0 : i32, i32
  }
  func.func @transform_6(%arg0: i32) -> (i32, i32) {
    %c0_i32 = arith.constant 0 : i32
    %c0_i32_0 = arith.constant 0 : i32
    %c0_i32_1 = arith.constant 0 : i32
    return %c0_i32, %c0_i32_0 : i32, i32
  }
  func.func @transform_7(%arg0: i32) -> (i32, i32) {
    %c0_i32 = arith.constant 0 : i32
    %c0_i32_0 = arith.constant 0 : i32
    %c0_i32_1 = arith.constant 0 : i32
    return %c0_i32, %c0_i32_0 : i32, i32
  }
  func.func @transform_8(%arg0: i32) -> (i32, i32) {
    %c0_i32 = arith.constant 0 : i32
    %c0_i32_0 = arith.constant 0 : i32
    %c0_i32_1 = arith.constant 0 : i32
    return %c0_i32, %c0_i32_0 : i32, i32
  }
  func.func @transform_9(%arg0: i32) -> (i32, i32) {
    %c0_i32 = arith.constant 0 : i32
    %c0_i32_0 = arith.constant 0 : i32
    %c0_i32_1 = arith.constant 0 : i32
    return %c0_i32, %c0_i32_0 : i32, i32
  }
  func.func @transform_10(%arg0: i32) -> (i32, i32) {
    %c0_i32 = arith.constant 0 : i32
    %c0_i32_0 = arith.constant 0 : i32
    %c0_i32_1 = arith.constant 0 : i32
    return %c0_i32, %c0_i32_0 : i32, i32
  }
  func.func @transform_11(%arg0: i32) -> (i32, i32) {
    %c0_i32 = arith.constant 0 : i32
    %c0_i32_0 = arith.constant 0 : i32
    %c0_i32_1 = arith.constant 0 : i32
    return %c0_i32, %c0_i32_0 : i32, i32
  }
  func.func @transform_12(%arg0: i32) -> (i32, i32) {
    %c0_i32 = arith.constant 0 : i32
    %c0_i32_0 = arith.constant 0 : i32
    %c0_i32_1 = arith.constant 0 : i32
    return %c0_i32, %c0_i32_0 : i32, i32
  }
  func.func @transform_13(%arg0: i32) -> (i32, i32) {
    %c0_i32 = arith.constant 0 : i32
    %c0_i32_0 = arith.constant 0 : i32
    %c0_i32_1 = arith.constant 0 : i32
    return %c0_i32, %c0_i32_0 : i32, i32
  }
  func.func @transform_14(%arg0: i32) -> (i32, i32) {
    %c0_i32 = arith.constant 0 : i32
    %c0_i32_0 = arith.constant 0 : i32
    %c0_i32_1 = arith.constant 0 : i32
    return %c0_i32, %c0_i32_0 : i32, i32
  }
  func.func @transform_15(%arg0: i32) -> (i32, i32) {
    %c0_i32 = arith.constant 0 : i32
    %c0_i32_0 = arith.constant 0 : i32
    %c0_i32_1 = arith.constant 0 : i32
    return %c0_i32, %c0_i32_0 : i32, i32
  }
  func.func @transform_16(%arg0: i32) -> (i32, i32) {
    %c0_i32 = arith.constant 0 : i32
    %c0_i32_0 = arith.constant 0 : i32
    %c0_i32_1 = arith.constant 0 : i32
    return %c0_i32, %c0_i32_0 : i32, i32
  }
  func.func @transform_17(%arg0: i32) -> (i32, i32) {
    %c0_i32 = arith.constant 0 : i32
    %c0_i32_0 = arith.constant 0 : i32
    %c0_i32_1 = arith.constant 0 : i32
    return %c0_i32, %c0_i32_0 : i32, i32
  }
  func.func @transform_18(%arg0: i32) -> (i32, i32) {
    %c0_i32 = arith.constant 0 : i32
    %c0_i32_0 = arith.constant 0 : i32
    %c0_i32_1 = arith.constant 0 : i32
    return %c0_i32, %c0_i32_0 : i32, i32
  }
  func.func @transform_19(%arg0: i32) -> (i32, i32) {
    %c0_i32 = arith.constant 0 : i32
    %c0_i32_0 = arith.constant 0 : i32
    %c0_i32_1 = arith.constant 0 : i32
    return %c0_i32, %c0_i32_0 : i32, i32
  }
  func.func @transform_20(%arg0: i32) -> (i32, i32) {
    %c0_i32 = arith.constant 0 : i32
    %c0_i32_0 = arith.constant 0 : i32
    %c0_i32_1 = arith.constant 0 : i32
    return %c0_i32, %c0_i32_0 : i32, i32
  }
  func.func @transform_21(%arg0: i32) -> (i32, i32) {
    %c0_i32 = arith.constant 0 : i32
    %c0_i32_0 = arith.constant 0 : i32
    %c0_i32_1 = arith.constant 0 : i32
    return %c0_i32, %c0_i32_0 : i32, i32
  }
  func.func @transform_22(%arg0: i32) -> (i32, i32) {
    %c0_i32 = arith.constant 0 : i32
    %c0_i32_0 = arith.constant 0 : i32
    return %arg0, %c0_i32 : i32, i32
  }
  func.func @transform_23(%arg0: i32) -> (i32, i32) {
    %c0_i32 = arith.constant 0 : i32
    %c0_i32_0 = arith.constant 0 : i32
    return %arg0, %c0_i32 : i32, i32
  }
}

module attributes {stable_mosaic.version = 11 : i64} {
  func.func @_cic_kernel(%arg0: i32, %arg1: memref<8x16xbf16, #tpu.memory_space<vmem>>, %arg2: memref<8x16xbf16, #tpu.memory_space<vmem>>, %arg3: memref<8x8xbf16, #tpu.memory_space<vmem>>, %arg4: memref<16x128xbf16, #tpu.memory_space<vmem>>, %arg5: memref<1x128xf32, #tpu.memory_space<vmem>>, %arg6: memref<128x128xbf16, #tpu.memory_space<vmem>>, %arg7: memref<1x128xf32, #tpu.memory_space<vmem>>, %arg8: memref<128x128xbf16, #tpu.memory_space<vmem>>, %arg9: memref<1x128xf32, #tpu.memory_space<vmem>>, %arg10: memref<8x128xbf16, #tpu.memory_space<vmem>>, %arg11: memref<1x128xf32, #tpu.memory_space<vmem>>, %arg12: memref<128x128xbf16, #tpu.memory_space<vmem>>, %arg13: memref<1x128xf32, #tpu.memory_space<vmem>>, %arg14: memref<128x128xbf16, #tpu.memory_space<vmem>>, %arg15: memref<1x128xf32, #tpu.memory_space<vmem>>, %arg16: memref<128x128xbf16, #tpu.memory_space<vmem>>, %arg17: memref<128x128xbf16, #tpu.memory_space<vmem>>, %arg18: memref<1x128xf32, #tpu.memory_space<vmem>>, %arg19: memref<128x128xbf16, #tpu.memory_space<vmem>>, %arg20: memref<1x128xf32, #tpu.memory_space<vmem>>, %arg21: memref<128x128xbf16, #tpu.memory_space<vmem>>, %arg22: memref<1x128xf32, #tpu.memory_space<vmem>>, %arg23: memref<8x128xf32, #tpu.memory_space<vmem>>, %arg24: memref<8x128xf32, #tpu.memory_space<vmem>>) attributes {dimension_semantics = [#tpu.dimension_semantics<parallel>], iteration_bounds = array<i64: 1>, scalar_prefetch = 0 : i64, scratch_operands = 0 : i64, tpu.core_type = #tpu.core_type<tc>, window_params = [{transform_indices = @transform_0, window_bounds = array<i64: 8, 16>}, {transform_indices = @transform_1, window_bounds = array<i64: 8, 16>}, {transform_indices = @transform_2, window_bounds = array<i64: 8, 8>}, {pipeline_mode = #tpu.pipeline_mode<synchronous>, transform_indices = @transform_3, window_bounds = array<i64: 16, 128>}, {pipeline_mode = #tpu.pipeline_mode<synchronous>, transform_indices = @transform_4, window_bounds = array<i64: 1, 128>}, {pipeline_mode = #tpu.pipeline_mode<synchronous>, transform_indices = @transform_5, window_bounds = array<i64: 128, 128>}, {pipeline_mode = #tpu.pipeline_mode<synchronous>, transform_indices = @transform_6, window_bounds = array<i64: 1, 128>}, {pipeline_mode = #tpu.pipeline_mode<synchronous>, transform_indices = @transform_7, window_bounds = array<i64: 128, 128>}, {pipeline_mode = #tpu.pipeline_mode<synchronous>, transform_indices = @transform_8, window_bounds = array<i64: 1, 128>}, {pipeline_mode = #tpu.pipeline_mode<synchronous>, transform_indices = @transform_9, window_bounds = array<i64: 8, 128>}, {pipeline_mode = #tpu.pipeline_mode<synchronous>, transform_indices = @transform_10, window_bounds = array<i64: 1, 128>}, {pipeline_mode = #tpu.pipeline_mode<synchronous>, transform_indices = @transform_11, window_bounds = array<i64: 128, 128>}, {pipeline_mode = #tpu.pipeline_mode<synchronous>, transform_indices = @transform_12, window_bounds = array<i64: 1, 128>}, {pipeline_mode = #tpu.pipeline_mode<synchronous>, transform_indices = @transform_13, window_bounds = array<i64: 128, 128>}, {pipeline_mode = #tpu.pipeline_mode<synchronous>, transform_indices = @transform_14, window_bounds = array<i64: 1, 128>}, {pipeline_mode = #tpu.pipeline_mode<synchronous>, transform_indices = @transform_15, window_bounds = array<i64: 128, 128>}, {pipeline_mode = #tpu.pipeline_mode<synchronous>, transform_indices = @transform_16, window_bounds = array<i64: 128, 128>}, {pipeline_mode = #tpu.pipeline_mode<synchronous>, transform_indices = @transform_17, window_bounds = array<i64: 1, 128>}, {pipeline_mode = #tpu.pipeline_mode<synchronous>, transform_indices = @transform_18, window_bounds = array<i64: 128, 128>}, {pipeline_mode = #tpu.pipeline_mode<synchronous>, transform_indices = @transform_19, window_bounds = array<i64: 1, 128>}, {pipeline_mode = #tpu.pipeline_mode<synchronous>, transform_indices = @transform_20, window_bounds = array<i64: 128, 128>}, {pipeline_mode = #tpu.pipeline_mode<synchronous>, transform_indices = @transform_21, window_bounds = array<i64: 1, 128>}, {transform_indices = @transform_22, window_bounds = array<i64: 8, 128>}, {transform_indices = @transform_23, window_bounds = array<i64: 8, 128>}]} {
    %c0 = arith.constant 0 : index
    %c0_0 = arith.constant 0 : index
    %0 = vector.load %arg1[%c0, %c0_0] : memref<8x16xbf16, #tpu.memory_space<vmem>>, vector<8x16xbf16>
    %c0_1 = arith.constant 0 : index
    %c0_2 = arith.constant 0 : index
    %1 = vector.load %arg2[%c0_1, %c0_2] : memref<8x16xbf16, #tpu.memory_space<vmem>>, vector<8x16xbf16>
    %2 = tpu.concatenate %0, %1 in 0 : vector<8x16xbf16>, vector<8x16xbf16> -> vector<16x16xbf16>
    %c0_3 = arith.constant 0 : index
    %c0_4 = arith.constant 0 : index
    %3 = vector.load %arg4[%c0_3, %c0_4] : memref<16x128xbf16, #tpu.memory_space<vmem>>, vector<16x128xbf16>
    %cst = arith.constant dense<0.000000e+00> : vector<16x128xf32>
    %4 = tpu.matmul %2, %3, %cst {dimension_numbers = #tpu.dot_dimension_numbers<[1], [0], [0], [1], [0, 0, 1, 1], [], []>} : vector<16x16xbf16>, vector<16x128xbf16>, vector<16x128xf32> -> vector<16x128xf32>
    %c0_5 = arith.constant 0 : index
    %c0_6 = arith.constant 0 : index
    %5 = vector.load %arg5[%c0_5, %c0_6] : memref<1x128xf32, #tpu.memory_space<vmem>>, vector<1x128xf32>
    %6 = vector.broadcast %5 : vector<1x128xf32> to vector<16x128xf32>
    %7 = arith.addf %4, %6 : vector<16x128xf32>
    %cst_7 = arith.constant 0.000000e+00 : f32
    %8 = vector.broadcast %cst_7 : f32 to vector<16x128xf32>
    %9 = arith.maximumf %7, %8 : vector<16x128xf32>
    %10 = arith.truncf %9 : vector<16x128xf32> to vector<16x128xbf16>
    %c0_8 = arith.constant 0 : index
    %c0_9 = arith.constant 0 : index
    %11 = vector.load %arg6[%c0_8, %c0_9] : memref<128x128xbf16, #tpu.memory_space<vmem>>, vector<128x128xbf16>
    %cst_10 = arith.constant dense<0.000000e+00> : vector<16x128xf32>
    %12 = tpu.matmul %10, %11, %cst_10 {dimension_numbers = #tpu.dot_dimension_numbers<[1], [0], [0], [1], [0, 0, 1, 1], [], []>} : vector<16x128xbf16>, vector<128x128xbf16>, vector<16x128xf32> -> vector<16x128xf32>
    %c0_11 = arith.constant 0 : index
    %c0_12 = arith.constant 0 : index
    %13 = vector.load %arg7[%c0_11, %c0_12] : memref<1x128xf32, #tpu.memory_space<vmem>>, vector<1x128xf32>
    %14 = vector.broadcast %13 : vector<1x128xf32> to vector<16x128xf32>
    %15 = arith.addf %12, %14 : vector<16x128xf32>
    %cst_13 = arith.constant 0.000000e+00 : f32
    %16 = vector.broadcast %cst_13 : f32 to vector<16x128xf32>
    %17 = arith.maximumf %15, %16 : vector<16x128xf32>
    %18 = arith.truncf %17 : vector<16x128xf32> to vector<16x128xbf16>
    %c0_14 = arith.constant 0 : index
    %c0_15 = arith.constant 0 : index
    %19 = vector.load %arg8[%c0_14, %c0_15] : memref<128x128xbf16, #tpu.memory_space<vmem>>, vector<128x128xbf16>
    %cst_16 = arith.constant dense<0.000000e+00> : vector<16x128xf32>
    %20 = tpu.matmul %18, %19, %cst_16 {dimension_numbers = #tpu.dot_dimension_numbers<[1], [0], [0], [1], [0, 0, 1, 1], [], []>} : vector<16x128xbf16>, vector<128x128xbf16>, vector<16x128xf32> -> vector<16x128xf32>
    %c0_17 = arith.constant 0 : index
    %c0_18 = arith.constant 0 : index
    %21 = vector.load %arg9[%c0_17, %c0_18] : memref<1x128xf32, #tpu.memory_space<vmem>>, vector<1x128xf32>
    %22 = vector.broadcast %21 : vector<1x128xf32> to vector<16x128xf32>
    %23 = arith.addf %20, %22 : vector<16x128xf32>
    %24 = vector.extract_strided_slice %23 {offsets = [0, 0], sizes = [8, 128], strides = [1, 1]} : vector<16x128xf32> to vector<8x128xf32>
    %25 = vector.extract_strided_slice %23 {offsets = [8, 0], sizes = [8, 128], strides = [1, 1]} : vector<16x128xf32> to vector<8x128xf32>
    %26 = arith.truncf %24 : vector<8x128xf32> to vector<8x128xbf16>
    %c0_19 = arith.constant 0 : index
    %c0_20 = arith.constant 0 : index
    %27 = vector.load %arg16[%c0_19, %c0_20] : memref<128x128xbf16, #tpu.memory_space<vmem>>, vector<128x128xbf16>
    %cst_21 = arith.constant dense<0.000000e+00> : vector<8x128xf32>
    %28 = tpu.matmul %26, %27, %cst_21 {dimension_numbers = #tpu.dot_dimension_numbers<[1], [0], [0], [1], [0, 0, 1, 1], [], []>} : vector<8x128xbf16>, vector<128x128xbf16>, vector<8x128xf32> -> vector<8x128xf32>
    %29 = arith.truncf %25 : vector<8x128xf32> to vector<8x128xbf16>
    %c0_22 = arith.constant 0 : index
    %c0_23 = arith.constant 0 : index
    %30 = vector.load %arg17[%c0_22, %c0_23] : memref<128x128xbf16, #tpu.memory_space<vmem>>, vector<128x128xbf16>
    %cst_24 = arith.constant dense<0.000000e+00> : vector<8x128xf32>
    %31 = tpu.matmul %29, %30, %cst_24 {dimension_numbers = #tpu.dot_dimension_numbers<[1], [0], [0], [1], [0, 0, 1, 1], [], []>} : vector<8x128xbf16>, vector<128x128xbf16>, vector<8x128xf32> -> vector<8x128xf32>
    %32 = arith.addf %28, %31 : vector<8x128xf32>
    %c0_25 = arith.constant 0 : index
    %c0_26 = arith.constant 0 : index
    %33 = vector.load %arg18[%c0_25, %c0_26] : memref<1x128xf32, #tpu.memory_space<vmem>>, vector<1x128xf32>
    %34 = vector.broadcast %33 : vector<1x128xf32> to vector<8x128xf32>
    %35 = arith.addf %32, %34 : vector<8x128xf32>
    %cst_27 = arith.constant 0.000000e+00 : f32
    %36 = vector.broadcast %cst_27 : f32 to vector<8x128xf32>
    %37 = arith.maximumf %35, %36 : vector<8x128xf32>
    %38 = arith.truncf %37 : vector<8x128xf32> to vector<8x128xbf16>
    %c0_28 = arith.constant 0 : index
    %c0_29 = arith.constant 0 : index
    %39 = vector.load %arg19[%c0_28, %c0_29] : memref<128x128xbf16, #tpu.memory_space<vmem>>, vector<128x128xbf16>
    %cst_30 = arith.constant dense<0.000000e+00> : vector<8x128xf32>
    %40 = tpu.matmul %38, %39, %cst_30 {dimension_numbers = #tpu.dot_dimension_numbers<[1], [0], [0], [1], [0, 0, 1, 1], [], []>} : vector<8x128xbf16>, vector<128x128xbf16>, vector<8x128xf32> -> vector<8x128xf32>
    %c0_31 = arith.constant 0 : index
    %c0_32 = arith.constant 0 : index
    %41 = vector.load %arg20[%c0_31, %c0_32] : memref<1x128xf32, #tpu.memory_space<vmem>>, vector<1x128xf32>
    %42 = vector.broadcast %41 : vector<1x128xf32> to vector<8x128xf32>
    %43 = arith.addf %40, %42 : vector<8x128xf32>
    %cst_33 = arith.constant 0.000000e+00 : f32
    %44 = vector.broadcast %cst_33 : f32 to vector<8x128xf32>
    %45 = arith.maximumf %43, %44 : vector<8x128xf32>
    %46 = arith.truncf %45 : vector<8x128xf32> to vector<8x128xbf16>
    %c0_34 = arith.constant 0 : index
    %c0_35 = arith.constant 0 : index
    %47 = vector.load %arg21[%c0_34, %c0_35] : memref<128x128xbf16, #tpu.memory_space<vmem>>, vector<128x128xbf16>
    %cst_36 = arith.constant dense<0.000000e+00> : vector<8x128xf32>
    %48 = tpu.matmul %46, %47, %cst_36 {dimension_numbers = #tpu.dot_dimension_numbers<[1], [0], [0], [1], [0, 0, 1, 1], [], []>} : vector<8x128xbf16>, vector<128x128xbf16>, vector<8x128xf32> -> vector<8x128xf32>
    %c0_37 = arith.constant 0 : index
    %c0_38 = arith.constant 0 : index
    %49 = vector.load %arg22[%c0_37, %c0_38] : memref<1x128xf32, #tpu.memory_space<vmem>>, vector<1x128xf32>
    %50 = vector.broadcast %49 : vector<1x128xf32> to vector<8x128xf32>
    %51 = arith.addf %48, %50 : vector<8x128xf32>
    %c0_39 = arith.constant 0 : index
    %c0_40 = arith.constant 0 : index
    %52 = vector.load %arg24[%c0_39, %c0_40] : memref<8x128xf32, #tpu.memory_space<vmem>>, vector<8x128xf32>
    tpu.vector_store %arg24[%c0_39, %c0_40], %51 {strides = array<i32>} : memref<8x128xf32, #tpu.memory_space<vmem>>, vector<8x128xf32>,
    %c0_41 = arith.constant 0 : index
    %c0_42 = arith.constant 0 : index
    %53 = vector.load %arg3[%c0_41, %c0_42] : memref<8x8xbf16, #tpu.memory_space<vmem>>, vector<8x8xbf16>
    %c0_43 = arith.constant 0 : index
    %c0_44 = arith.constant 0 : index
    %54 = vector.load %arg10[%c0_43, %c0_44] : memref<8x128xbf16, #tpu.memory_space<vmem>>, vector<8x128xbf16>
    %cst_45 = arith.constant dense<0.000000e+00> : vector<8x128xf32>
    %55 = tpu.matmul %53, %54, %cst_45 {dimension_numbers = #tpu.dot_dimension_numbers<[1], [0], [0], [1], [0, 0, 1, 1], [], []>} : vector<8x8xbf16>, vector<8x128xbf16>, vector<8x128xf32> -> vector<8x128xf32>
    %c0_46 = arith.constant 0 : index
    %c0_47 = arith.constant 0 : index
    %56 = vector.load %arg11[%c0_46, %c0_47] : memref<1x128xf32, #tpu.memory_space<vmem>>, vector<1x128xf32>
    %57 = vector.broadcast %56 : vector<1x128xf32> to vector<8x128xf32>
    %58 = arith.addf %55, %57 : vector<8x128xf32>
    %cst_48 = arith.constant 0.000000e+00 : f32
    %59 = vector.broadcast %cst_48 : f32 to vector<8x128xf32>
    %60 = arith.maximumf %58, %59 : vector<8x128xf32>
    %61 = arith.truncf %60 : vector<8x128xf32> to vector<8x128xbf16>
    %c0_49 = arith.constant 0 : index
    %c0_50 = arith.constant 0 : index
    %62 = vector.load %arg12[%c0_49, %c0_50] : memref<128x128xbf16, #tpu.memory_space<vmem>>, vector<128x128xbf16>
    %cst_51 = arith.constant dense<0.000000e+00> : vector<8x128xf32>
    %63 = tpu.matmul %61, %62, %cst_51 {dimension_numbers = #tpu.dot_dimension_numbers<[1], [0], [0], [1], [0, 0, 1, 1], [], []>} : vector<8x128xbf16>, vector<128x128xbf16>, vector<8x128xf32> -> vector<8x128xf32>
    %c0_52 = arith.constant 0 : index
    %c0_53 = arith.constant 0 : index
    %64 = vector.load %arg13[%c0_52, %c0_53] : memref<1x128xf32, #tpu.memory_space<vmem>>, vector<1x128xf32>
    %65 = vector.broadcast %64 : vector<1x128xf32> to vector<8x128xf32>
    %66 = arith.addf %63, %65 : vector<8x128xf32>
    %cst_54 = arith.constant 0.000000e+00 : f32
    %67 = vector.broadcast %cst_54 : f32 to vector<8x128xf32>
    %68 = arith.maximumf %66, %67 : vector<8x128xf32>
    %69 = arith.truncf %68 : vector<8x128xf32> to vector<8x128xbf16>
    %c0_55 = arith.constant 0 : index
    %c0_56 = arith.constant 0 : index
    %70 = vector.load %arg14[%c0_55, %c0_56] : memref<128x128xbf16, #tpu.memory_space<vmem>>, vector<128x128xbf16>
    %cst_57 = arith.constant dense<0.000000e+00> : vector<8x128xf32>
    %71 = tpu.matmul %69, %70, %cst_57 {dimension_numbers = #tpu.dot_dimension_numbers<[1], [0], [0], [1], [0, 0, 1, 1], [], []>} : vector<8x128xbf16>, vector<128x128xbf16>, vector<8x128xf32> -> vector<8x128xf32>
    %c0_58 = arith.constant 0 : index
    %c0_59 = arith.constant 0 : index
    %72 = vector.load %arg15[%c0_58, %c0_59] : memref<1x128xf32, #tpu.memory_space<vmem>>, vector<1x128xf32>
    %73 = vector.broadcast %72 : vector<1x128xf32> to vector<8x128xf32>
    %74 = arith.addf %71, %73 : vector<8x128xf32>
    %c0_60 = arith.constant 0 : index
    %c0_61 = arith.constant 0 : index
    %75 = vector.load %arg23[%c0_60, %c0_61] : memref<8x128xf32, #tpu.memory_space<vmem>>, vector<8x128xf32>
    tpu.vector_store %arg23[%c0_60, %c0_61], %74 {strides = array<i32>} : memref<8x128xf32, #tpu.memory_space<vmem>>, vector<8x128xf32>,
    return
  }
  func.func @transform_0(%arg0: i32) -> (i32, i32) {
    %c0_i32 = arith.constant 0 : i32
    %c0_i32_0 = arith.constant 0 : i32
    return %arg0, %c0_i32 : i32, i32
  }
  func.func @transform_1(%arg0: i32) -> (i32, i32) {
    %c0_i32 = arith.constant 0 : i32
    %c0_i32_0 = arith.constant 0 : i32
    return %arg0, %c0_i32 : i32, i32
  }
  func.func @transform_2(%arg0: i32) -> (i32, i32) {
    %c0_i32 = arith.constant 0 : i32
    %c0_i32_0 = arith.constant 0 : i32
    return %arg0, %c0_i32 : i32, i32
  }
  func.func @transform_3(%arg0: i32) -> (i32, i32) {
    %c0_i32 = arith.constant 0 : i32
    %c0_i32_0 = arith.constant 0 : i32
    %c0_i32_1 = arith.constant 0 : i32
    return %c0_i32, %c0_i32_0 : i32, i32
  }
  func.func @transform_4(%arg0: i32) -> (i32, i32) {
    %c0_i32 = arith.constant 0 : i32
    %c0_i32_0 = arith.constant 0 : i32
    %c0_i32_1 = arith.constant 0 : i32
    return %c0_i32, %c0_i32_0 : i32, i32
  }
  func.func @transform_5(%arg0: i32) -> (i32, i32) {
    %c0_i32 = arith.constant 0 : i32
    %c0_i32_0 = arith.constant 0 : i32
    %c0_i32_1 = arith.constant 0 : i32
    return %c0_i32, %c0_i32_0 : i32, i32
  }
  func.func @transform_6(%arg0: i32) -> (i32, i32) {
    %c0_i32 = arith.constant 0 : i32
    %c0_i32_0 = arith.constant 0 : i32
    %c0_i32_1 = arith.constant 0 : i32
    return %c0_i32, %c0_i32_0 : i32, i32
  }
  func.func @transform_7(%arg0: i32) -> (i32, i32) {
    %c0_i32 = arith.constant 0 : i32
    %c0_i32_0 = arith.constant 0 : i32
    %c0_i32_1 = arith.constant 0 : i32
    return %c0_i32, %c0_i32_0 : i32, i32
  }
  func.func @transform_8(%arg0: i32) -> (i32, i32) {
    %c0_i32 = arith.constant 0 : i32
    %c0_i32_0 = arith.constant 0 : i32
    %c0_i32_1 = arith.constant 0 : i32
    return %c0_i32, %c0_i32_0 : i32, i32
  }
  func.func @transform_9(%arg0: i32) -> (i32, i32) {
    %c0_i32 = arith.constant 0 : i32
    %c0_i32_0 = arith.constant 0 : i32
    %c0_i32_1 = arith.constant 0 : i32
    return %c0_i32, %c0_i32_0 : i32, i32
  }
  func.func @transform_10(%arg0: i32) -> (i32, i32) {
    %c0_i32 = arith.constant 0 : i32
    %c0_i32_0 = arith.constant 0 : i32
    %c0_i32_1 = arith.constant 0 : i32
    return %c0_i32, %c0_i32_0 : i32, i32
  }
  func.func @transform_11(%arg0: i32) -> (i32, i32) {
    %c0_i32 = arith.constant 0 : i32
    %c0_i32_0 = arith.constant 0 : i32
    %c0_i32_1 = arith.constant 0 : i32
    return %c0_i32, %c0_i32_0 : i32, i32
  }
  func.func @transform_12(%arg0: i32) -> (i32, i32) {
    %c0_i32 = arith.constant 0 : i32
    %c0_i32_0 = arith.constant 0 : i32
    %c0_i32_1 = arith.constant 0 : i32
    return %c0_i32, %c0_i32_0 : i32, i32
  }
  func.func @transform_13(%arg0: i32) -> (i32, i32) {
    %c0_i32 = arith.constant 0 : i32
    %c0_i32_0 = arith.constant 0 : i32
    %c0_i32_1 = arith.constant 0 : i32
    return %c0_i32, %c0_i32_0 : i32, i32
  }
  func.func @transform_14(%arg0: i32) -> (i32, i32) {
    %c0_i32 = arith.constant 0 : i32
    %c0_i32_0 = arith.constant 0 : i32
    %c0_i32_1 = arith.constant 0 : i32
    return %c0_i32, %c0_i32_0 : i32, i32
  }
  func.func @transform_15(%arg0: i32) -> (i32, i32) {
    %c0_i32 = arith.constant 0 : i32
    %c0_i32_0 = arith.constant 0 : i32
    %c0_i32_1 = arith.constant 0 : i32
    return %c0_i32, %c0_i32_0 : i32, i32
  }
  func.func @transform_16(%arg0: i32) -> (i32, i32) {
    %c0_i32 = arith.constant 0 : i32
    %c0_i32_0 = arith.constant 0 : i32
    %c0_i32_1 = arith.constant 0 : i32
    return %c0_i32, %c0_i32_0 : i32, i32
  }
  func.func @transform_17(%arg0: i32) -> (i32, i32) {
    %c0_i32 = arith.constant 0 : i32
    %c0_i32_0 = arith.constant 0 : i32
    %c0_i32_1 = arith.constant 0 : i32
    return %c0_i32, %c0_i32_0 : i32, i32
  }
  func.func @transform_18(%arg0: i32) -> (i32, i32) {
    %c0_i32 = arith.constant 0 : i32
    %c0_i32_0 = arith.constant 0 : i32
    %c0_i32_1 = arith.constant 0 : i32
    return %c0_i32, %c0_i32_0 : i32, i32
  }
  func.func @transform_19(%arg0: i32) -> (i32, i32) {
    %c0_i32 = arith.constant 0 : i32
    %c0_i32_0 = arith.constant 0 : i32
    %c0_i32_1 = arith.constant 0 : i32
    return %c0_i32, %c0_i32_0 : i32, i32
  }
  func.func @transform_20(%arg0: i32) -> (i32, i32) {
    %c0_i32 = arith.constant 0 : i32
    %c0_i32_0 = arith.constant 0 : i32
    %c0_i32_1 = arith.constant 0 : i32
    return %c0_i32, %c0_i32_0 : i32, i32
  }
  func.func @transform_21(%arg0: i32) -> (i32, i32) {
    %c0_i32 = arith.constant 0 : i32
    %c0_i32_0 = arith.constant 0 : i32
    %c0_i32_1 = arith.constant 0 : i32
    return %c0_i32, %c0_i32_0 : i32, i32
  }
  func.func @transform_22(%arg0: i32) -> (i32, i32) {
    %c0_i32 = arith.constant 0 : i32
    %c0_i32_0 = arith.constant 0 : i32
    return %arg0, %c0_i32 : i32, i32
  }
  func.func @transform_23(%arg0: i32) -> (i32, i32) {
    %c0_i32 = arith.constant 0 : i32
    %c0_i32_0 = arith.constant 0 : i32
    return %arg0, %c0_i32 : i32, i32
  }
}

</mosaic_0001>

<bundles_post_ra>
// kernel: tpu_custom_call.1
= control target key start
LH: loop header
LB: loop body
LE: loop exit
PB: predicated region body
PF: predicated region fallthrough
CT: control target
= control target key end

     0   :  { %s1968_s0 = inlined_call_operand.hbm [shape: bf16[8,16], index: 0, kind: input, shape index: {}]   ;;  %s1969_s1 = inlined_call_operand.hbm [shape: bf16[8,16], index: 1, kind: input, shape index: {}]   ;;  %s1970_s2 = inlined_call_operand.hbm [shape: bf16[8,8], index: 2, kind: input, shape index: {}]   ;;  %s1971_s3 = inlined_call_operand.hbm [shape: bf16[16,128], index: 3, kind: input, shape index: {}]   ;;  %s1972_s4 = inlined_call_operand.vmem [shape: f32[1,128], index: 4, kind: input, shape index: {}]   ;;  %s1973_s5 = inlined_call_operand.hbm [shape: bf16[128,128], index: 5, kind: input, shape index: {}]   ;;  %s1974_s6 = inlined_call_operand.vmem [shape: f32[1,128], index: 6, kind: input, shape index: {}]   ;;  %s1975_s7 = inlined_call_operand.hbm [shape: bf16[128,128], index: 7, kind: input, shape index: {}]   ;;  %s1976_s8 = inlined_call_operand.vmem [shape: f32[1,128], index: 8, kind: input, shape index: {}]   ;;  %s1977_s9 = inlined_call_operand.vmem [shape: bf16[8,128], index: 9, kind: input, shape index: {}]   ;;  %s1978_s10 = inlined_call_operand.vmem [shape: f32[1,128], index: 10, kind: input, shape index: {}]   ;;  %s1979_s11 = inlined_call_operand.hbm [shape: bf16[128,128], index: 11, kind: input, shape index: {}]   ;;  %s1980_s12 = inlined_call_operand.vmem [shape: f32[1,128], index: 12, kind: input, shape index: {}]   ;;  %s1981_s13 = inlined_call_operand.hbm [shape: bf16[128,128], index: 13, kind: input, shape index: {}]   ;;  %s1982_s14 = inlined_call_operand.vmem [shape: f32[1,128], index: 14, kind: input, shape index: {}]   ;;  %s1983_s15 = inlined_call_operand.hbm [shape: bf16[128,128], index: 15, kind: input, shape index: {}]   ;;  %s1984_s16 = inlined_call_operand.hbm [shape: bf16[128,128], index: 16, kind: input, shape index: {}]   ;;  %s1985_s17 = inlined_call_operand.vmem [shape: f32[1,128], index: 17, kind: input, shape index: {}]   ;;  %s1986_s18 = inlined_call_operand.hbm [shape: bf16[128,128], index: 18, kind: input, shape index: {}]   ;;  %s1987_s19 = inlined_call_operand.vmem [shape: f32[1,128], index: 19, kind: input, shape index: {}]   ;;  %s1988_s20 = inlined_call_operand.hbm [shape: bf16[128,128], index: 20, kind: input, shape index: {}]   ;;  %s1989_s21 = inlined_call_operand.vmem [shape: f32[1,128], index: 21, kind: input, shape index: {}]   ;;  %s1990_s22 = inlined_call_operand.hbm [shape: f32[8,128], index: 22, kind: output, shape index: {0}]   ;;  %s1991_s23 = inlined_call_operand.hbm [shape: f32[8,128], index: 23, kind: output, shape index: {1}]  }
   0x1   :  { %1994 = sst [smem:[#allocation34_spill]] %s1968_s0 }
   0x2   :  { %1995 = sst [smem:[#allocation35_spill]] %s1969_s1 }
   0x3   :  { %1996 = sst [smem:[#allocation36_spill]] %s1970_s2 }
   0x4   :  { %1997 = sst [smem:[#allocation37_spill]] %s1971_s3 }
   0x5   :  { %1998 = sst [smem:[#allocation38_spill]] %s1972_s4 }
   0x6   :  { %1999 = sst [smem:[#allocation39_spill]] %s1973_s5 }
   0x7   :  { %2000 = sst [smem:[#allocation40_spill]] %s1974_s6 }
   0x8   :  { %2001 = sst [smem:[#allocation41_spill]] %s1975_s7 }
   0x9   :  { %2002 = sst [smem:[#allocation42_spill]] %s1990_s22 }
   0xa   :  { %29 = vsyncpa [#allocation3], 0 }
   0xb   :  { %30 = vsyncpa [#allocation6], 0 }
   0xc   :  { %31 = vsyncpa [#allocation9], 0 }
   0xd   :  { %32 = vsyncpa [#allocation12], 0 }
   0xe   :  { %33 = vsyncpa [#allocation15], 0 }
   0xf   :  { %34 = vsyncpa [#allocation18], 0 }
  0x10   :  { %35 = vsyncpa [#allocation21], 0 }
  0x11   :  { %36 = vsyncpa [#allocation4], 0  ;;  %s2003_s24 = sld [smem:[#allocation35_spill]] }
  0x17   :  { %s54_s25 = sshll.u32 %s2003_s24, 4  ;;  %s55_s25 = int_to_ptr.hbm [resolvable:$true] %s54_s25 }
  0x18   :  { %37 = vsyncpa [#allocation24], 0  ;;  %s1731_s5 = smov [#allocation5]   ;;  %s2004_s6 = sld [smem:[#allocation37_spill]] }
  0x19   :  { %s56_s1 = sshll.u32 %s1731_s5, 4  ;;  %s1732_s7 = smov [#allocation8]   ;;  %s57_s1 = int_to_ptr.vmem [resolvable:$true] %s56_s1 }
  0x1a   :  { %59 = dma.hbm_to_vmem [thread:$0]  %s55_s25, 64, %s57_s1, [#allocation6]  }
  0x1b   :  { %s77_s28 = sshll.u32 %s1732_s7, 4  ;;  %s1992_s29 = smov 64   ;;  %s78_s28 = int_to_ptr.vmem [resolvable:$true] %s77_s28 }
  0x1c   :  { %s1734_s3 = smov 4   ;;  %s2005_s30 = sld [smem:[#allocation41_spill]] }
  0x1d   :  { %s1735_s5 = smov [#allocation11]   ;;  %s139_s1 = sshll.u32 %s1981_s13, 4  ;;  %s140_s1 = int_to_ptr.hbm [resolvable:$true] %s139_s1 }
  0x1e   :  { %s75_s27 = sshll.u32 %s2004_s6, 4  ;;  %s107_s22 = sshll.u32 %s1735_s5, 4  ;;  %s76_s27 = int_to_ptr.hbm [resolvable:$true] %s75_s27  ;;  %s108_s22 = int_to_ptr.vmem [resolvable:$true] %s107_s22 }
  0x1f   :  { %83 = dma.hbm_to_vmem [thread:$0]  %s76_s27, 128, %s78_s28, [#allocation9], %s1992_s29, %s1992_s29, %s1734_s3  }
  0x20   :  { %s1736_s2 = smov [#allocation14]   ;;  %s167_s28 = sshll.u32 %s1984_s16, 4  ;;  %s168_s28 = int_to_ptr.hbm [resolvable:$true] %s167_s28 }
  0x21   :  { %s141_s6 = sshll.u32 %s1736_s2, 4  ;;  %s2006_s13 = sld [smem:[#allocation34_spill]]  ;;  %s142_s6 = int_to_ptr.vmem [resolvable:$true] %s141_s6 }
  0x22   :  { %s105_s24 = sshll.u32 %s2005_s30, 4  ;;  %s1737_s5 = smov [#allocation17]   ;;  %s106_s24 = int_to_ptr.hbm [resolvable:$true] %s105_s24 }
  0x23   :  { %113 = dma.hbm_to_vmem [thread:$0]  %s106_s24, 1024, %s108_s22, [#allocation12], %s1992_s29, %s1992_s29, %s1734_s3  }
  0x24   :  { %147 = dma.hbm_to_vmem [thread:$0]  %s140_s1, 1024, %s142_s6, [#allocation15], %s1992_s29, %s1992_s29, %s1734_s3  }
  0x25   :  { %s169_s26 = sshll.u32 %s1737_s5, 4  ;;  %s1738_s22 = smov [#allocation2]   ;;  %s170_s26 = int_to_ptr.vmem [resolvable:$true] %s169_s26 }
  0x26   :  { %175 = dma.hbm_to_vmem [thread:$0]  %s168_s28, 1024, %s170_s26, [#allocation18], %s1992_s29, %s1992_s29, %s1734_s3  }
  0x27   :  { %s43_s30 = sshll.u32 %s2006_s13, 4  ;;  %s45_s16 = sshll.u32 %s1738_s22, 4  ;;  %s44_s30 = int_to_ptr.hbm [resolvable:$true] %s43_s30  ;;  %s46_s16 = int_to_ptr.vmem [resolvable:$true] %s45_s16 }
  0x28   :  { %s2007_s2 = sld [smem:[#allocation36_spill]]  ;;  %s1739_s4 = smov [#allocation7]  }
  0x29   :  { %48 = dma.hbm_to_vmem [thread:$0]  %s44_s30, 64, %s46_s16, [#allocation3]  }
  0x2a   :  { %s2008_s7 = sld [smem:[#allocation39_spill]]  ;;  %s67_s13 = sshll.u32 %s1739_s4, 4  ;;  %s68_s13 = int_to_ptr.vmem [resolvable:$true] %s67_s13 }
  0x2b   :  { %s1740_s5 = smov [#allocation10]   ;;  %s124_s29 = sshll.u32 %s1979_s11, 4  ;;  %s125_s29 = int_to_ptr.hbm [resolvable:$true] %s124_s29 }
  0x2c   :  { %s92_s28 = sshll.u32 %s1740_s5, 4  ;;  %s2009_s24 = smov 64   ;;  %s93_s28 = int_to_ptr.vmem [resolvable:$true] %s92_s28 }
  0x2d   :  { %s154_s25 = sshll.u32 %s1983_s15, 4  ;;  %s182_s4 = sshll.u32 %s1986_s18, 4  ;;  %s155_s25 = int_to_ptr.hbm [resolvable:$true] %s154_s25  ;;  %s183_s4 = int_to_ptr.hbm [resolvable:$true] %s182_s4 }
  0x2e   :  { %s65_s27 = sshll.u32 %s2007_s2, 4  ;;  %s1741_s2 = smov [#allocation13]   ;;  %s66_s27 = int_to_ptr.hbm [resolvable:$true] %s65_s27 }
  0x2f   :  { %70 = dma.hbm_to_vmem [thread:$0]  %s66_s27, 64, %s68_s13, [#allocation6]  }
  0x30   :  { %s90_s0 = sshll.u32 %s2008_s7, 4  ;;  %s126_s1 = sshll.u32 %s1741_s2, 4  ;;  %s91_s0 = int_to_ptr.hbm [resolvable:$true] %s90_s0  ;;  %s127_s1 = int_to_ptr.vmem [resolvable:$true] %s126_s1 }
  0x31   :  { %98 = dma.hbm_to_vmem [thread:$0]  %s91_s0, 1024, %s93_s28, [#allocation9], %s2009_s24, %s2009_s24, %s1734_s3  }
  0x32   :  { %132 = dma.hbm_to_vmem [thread:$0]  %s125_s29, 1024, %s127_s1, [#allocation12], %s2009_s24, %s2009_s24, %s1734_s3  }
  0x33   :  { %s1742_s27 = smov [#allocation16]   ;;  %s197_s13 = sshll.u32 %s1988_s20, 4  ;;  %s198_s13 = int_to_ptr.hbm [resolvable:$true] %s197_s13 }
  0x34   :  { %s156_s11 = sshll.u32 %s1742_s27, 4  ;;  %s1743_s5 = smov [#allocation19]   ;;  %s157_s11 = int_to_ptr.vmem [resolvable:$true] %s156_s11 }
  0x35   :  { %162 = dma.hbm_to_vmem [thread:$0]  %s155_s25, 1024, %s157_s11, [#allocation15], %s2009_s24, %s2009_s24, %s1734_s3  }
  0x36   :  { %s184_s28 = sshll.u32 %s1743_s5, 4  ;;  %s1744_s29 = smov [#allocation20]   ;;  %s185_s28 = int_to_ptr.vmem [resolvable:$true] %s184_s28 }
  0x37   :  { %190 = dma.hbm_to_vmem [thread:$0]  %s183_s4, 1024, %s185_s28, [#allocation18], %s2009_s24, %s2009_s24, %s1734_s3  }
  0x38   :  { %s199_s18 = sshll.u32 %s1744_s29, 4  ;;  %s200_s18 = int_to_ptr.vmem [resolvable:$true] %s199_s18 }
  0x39   :  { %205 = dma.hbm_to_vmem [thread:$0]  %s198_s13, 1024, %s200_s18, [#allocation21], %s2009_s24, %s2009_s24, %s1734_s3  }
  0x3a   :  { %1713 = dma.done.wait [#allocation3], 64  }
  0x3b   :  { %1714 = vsyncadd [#allocation3], 4294967232 }
  0x3c   :  { %1715 = dma.done.wait [#allocation6], 128  }
  0x3d   :  { %1716 = vsyncadd [#allocation6], 4294967168 }
  0x3e   :  { %1717 = dma.done.wait [#allocation9], 1152  }
  0x3f   :  { %1718 = vsyncadd [#allocation9], 4294966144 }
  0x40   :  { %1719 = dma.done.wait [#allocation12], 2048  }
  0x41   :  { %1720 = vsyncadd [#allocation12], 4294965248 }
  0x42   :  { %1721 = dma.done.wait [#allocation15], 2048  }
  0x43   :  { %1722 = vsyncadd [#allocation15], 4294965248 }
  0x44   :  { %1723 = dma.done.wait [#allocation18], 2048  }
  0x45   :  { %1724 = vsyncadd [#allocation18], 4294965248 }
  0x46   :  { %1725 = dma.done.wait [#allocation21], 1024  }
  0x47   :  { %1726 = vsyncadd [#allocation21], 4294966272  ;;  %v1287_v0 = vld [vmem:[#allocation8] sm:$0xff]  ;;  %v258_v1 = vld [vmem:[#allocation5] sm:$0xf]  ;;  %vm262_vm0 = vcmask 1043456  }
  0x48   :  { %v260_v2 = vunpack.c.l.b16 %v258_v1  ;;  %v1295_v3 = vld [vmem:[#allocation10 + $0x38] sm:$0xff]  ;;  %288 = vmatpush.bf16.msra.mxu0 %v1287_v0  ;;  %v257_v4 = vld [vmem:[#allocation2] sm:$0xf]  ;;  %vm278_vm1 = vcmask 130048   ;;  %v1294_v5 = vld [vmem:[#allocation10 + $0x30] sm:$0xff]  ;;  %s2010_s26 = sld [smem:[#allocation38_spill]] }
  0x49   :  { %366 = vmatpush.bf16.msra.mxu1 %v1295_v3  ;;  %v1293_v8 = vld [vmem:[#allocation10 + $0x28] sm:$0xff]  ;;  %v1292_v9 = vld [vmem:[#allocation10 + $0x20] sm:$0xff]  ;;  %v1291_v10 = vld [vmem:[#allocation10 + $0x18] sm:$0xff]  ;;  %s2011_s30 = sld [smem:[#allocation40_spill]]  ;;  %vm799_vm2 = vcmask 64512   ;;  %s1004_s28 = sshll.u32 %s1991_s23, 4  ;;  %s1005_s28 = int_to_ptr.hbm [resolvable:$true] %s1004_s28 }
  0x4a   :  { %v261_v6 = vpack.c.b16 %v260_v2, %v260_v2  ;;  %v1290_v11 = vld [vmem:[#allocation10 + $0x10] sm:$0xff]  ;;  %v1289_v12 = vld [vmem:[#allocation10 + $0x8] sm:$0xff]  ;;  %v1288_v13 = vld [vmem:[#allocation10] sm:$0xff]  ;;  %s1746_s18 = smov [#allocation22]  }
  0x4b   :  { %v1303_v14 = vld [vmem:[#allocation11 + $0x38] sm:$0xff]  ;;  %v1302_v15 = vld [vmem:[#allocation11 + $0x30] sm:$0xff]  ;;  %v1301_v16 = vld [vmem:[#allocation11 + $0x28] sm:$0xff]  ;;  %s991_s20 = sshll.u32 %s1746_s18, 4  ;;  %s992_s20 = int_to_ptr.vmem [resolvable:$true] %s991_s20 }
  0x4c   :  { %v265_v7 = vsel %vm262_vm0, %v257_v4, %v261_v6  ;;  %451 = vmatpush.bf16.msra.mxu2 %v1303_v14  ;;  %v1300_v17 = vld [vmem:[#allocation11 + $0x20] sm:$0xff]  ;;  %v1299_v26 = vld [vmem:[#allocation11 + $0x18] sm:$0xff]  ;;  %v1298_v27 = vld [vmem:[#allocation11 + $0x10] sm:$0xff] }
  0x4d   :  { %1029 = vmatmul.msk.bf16.vlgmr.msra.gmra.mxu0 %vm278_vm1, %v265_v7  ;;  %367 = vmatpush.bf16.msra.mxu1 %v1294_v5  ;;  %v1297_v28 = vld [vmem:[#allocation11 + $0x8] sm:$0xff]  ;;  %v1296_v29 = vld [vmem:[#allocation11] sm:$0xff]  ;;  %v1311_v30 = vld [vmem:[#allocation16 + $0x38] sm:$0xff] }
  0x4e   :  { %v1368_v19 = vld [vmem:[%s2010_s26] ss:$0 sm:$0xff]  ;;  %v1319_v31 = vld [vmem:[#allocation17 + $0x38] sm:$0xff]  ;;  %608 = vmatpush.bf16.msrb.mxu0 %v1311_v30  ;;  %v1310_v32 = vld [vmem:[#allocation16 + $0x30] sm:$0xff]  ;;  %s2012_s26 = sld [smem:[#allocation42_spill]] }
  0x4f   :  { %547 = vmatpush.bf16.msra.mxu3 %v1319_v31  ;;  %v1318_v33 = vld [vmem:[#allocation17 + $0x30] sm:$0xff]  ;;  %v1309_v34 = vld [vmem:[#allocation16 + $0x28] sm:$0xff]  ;;  %v1308_v36 = vld [vmem:[#allocation16 + $0x20] sm:$0xff] }
  0x50   :  { %452 = vmatpush.bf16.msra.mxu2 %v1302_v15  ;;  %v1317_v35 = vld [vmem:[#allocation17 + $0x28] sm:$0xff]  ;;  %v1316_v37 = vld [vmem:[#allocation17 + $0x20] sm:$0xff]  ;;  %v1307_v38 = vld [vmem:[#allocation16 + $0x18] sm:$0xff] }
  0x51   :  { %368 = vmatpush.bf16.msra.mxu1 %v1293_v8  ;;  %v1315_v39 = vld [vmem:[#allocation17 + $0x18] sm:$0xff]  ;;  %v1306_v41 = vld [vmem:[#allocation16 + $0x10] sm:$0xff]  ;;  %v1369_v42 = vld [vmem:[%s2011_s30] ss:$0 sm:$0xff] }
  0x52   :  { %609 = vmatpush.bf16.msrb.mxu0 %v1310_v32  ;;  %v1305_v43 = vld [vmem:[#allocation16 + $0x8] sm:$0xff]  ;;  %v1314_v50 = vld [vmem:[#allocation17 + $0x10] sm:$0xff]  ;;  %v1304_v51 = vld [vmem:[#allocation16] sm:$0xff] }
  0x53   :  { %548 = vmatpush.bf16.msra.mxu3 %v1318_v33  ;;  %v1313_v52 = vld [vmem:[#allocation17 + $0x8] sm:$0xff]  ;;  %v1312_v53 = vld [vmem:[#allocation17] sm:$0xff]  ;;  %v1327_v57 = vld [vmem:[#allocation19 + $0x38] sm:$0xff] }
  0x54   :  { %453 = vmatpush.bf16.msra.mxu2 %v1301_v16  ;;  %v794_v54 = vld [vmem:[%s1977_s9] sm:$0xf]  ;;  %v1326_v58 = vld [vmem:[#allocation19 + $0x30] sm:$0xff]  ;;  %v1324_v3 = vld [vmem:[#allocation19 + $0x20] sm:$0xff]  ;;  %s993_s22 = sshll.u32 %s2012_s26, 4  ;;  %s994_s22 = int_to_ptr.hbm [resolvable:$true] %s993_s22 }
  0x55   :  { %369 = vmatpush.bf16.msra.mxu1 %v1292_v9  ;;  %v804_v55 = vsel %vm262_vm0, %v794_v54, 0  ;;  %v1370_v56 = vld [vmem:[%s1976_s8] ss:$0 sm:$0xff]  ;;  %v793_v1 = vld [vmem:[#allocation7] sm:$0xf]  ;;  %v1343_v4 = vld [vmem:[#allocation13 + $0x38] sm:$0xff] }
  0x56   :  { %610 = vmatpush.bf16.msrb.mxu0 %v1309_v34  ;;  %v1325_v2 = vld [vmem:[#allocation19 + $0x28] sm:$0xff]  ;;  %v1323_v5 = vld [vmem:[#allocation19 + $0x18] sm:$0xff]  ;;  %v1342_v6 = vld [vmem:[#allocation13 + $0x30] sm:$0xff] }
  0x57   :  { %549 = vmatpush.bf16.msra.mxu3 %v1317_v35  ;;  %v1322_v7 = vld [vmem:[#allocation19 + $0x10] sm:$0xff]  ;;  %v1341_v8 = vld [vmem:[#allocation13 + $0x28] sm:$0xff]  ;;  %v1336_v16 = vld [vmem:[#allocation13] sm:$0xff] }
  0x58   :  { %454 = vmatpush.bf16.msra.mxu2 %v1300_v17  ;;  %v1321_v9 = vld [vmem:[#allocation19 + $0x8] sm:$0xff]  ;;  %v1335_v17 = vld [vmem:[#allocation20 + $0x38] sm:$0xff]  ;;  %v1330_v33 = vld [vmem:[#allocation20 + $0x10] sm:$0xff] }
  0x59   :  { %370 = vmatpush.bf16.msra.mxu1 %v1291_v10  ;;  %v1340_v10 = vld [vmem:[#allocation13 + $0x20] sm:$0xff]  ;;  %v1337_v14 = vld [vmem:[#allocation13 + $0x8] sm:$0xff]  ;;  %v1331_v30 = vld [vmem:[#allocation20 + $0x18] sm:$0xff] }
  0x5a   :  { %611 = vmatpush.bf16.msrb.mxu0 %v1308_v36  ;;  %v1372_v34 = vld [vmem:[%s1978_s10] ss:$0 sm:$0xff] }
  0x5b   :  { %550 = vmatpush.bf16.msra.mxu3 %v1316_v37 }
  0x5c   :  { %455 = vmatpush.bf16.msra.mxu2 %v1299_v26 }
  0x5d   :  { %371 = vmatpush.bf16.msra.mxu1 %v1290_v11  ;;  %v1320_v11 = vld [vmem:[#allocation19] sm:$0xff] }
  0x5e   :  { %612 = vmatpush.bf16.msrb.mxu0 %v1307_v38 }
  0x5f   :  { %551 = vmatpush.bf16.msra.mxu3 %v1315_v39 }
  0x60   :  { %456 = vmatpush.bf16.msra.mxu2 %v1298_v27  ;;  %v1332_v27 = vld [vmem:[#allocation20 + $0x20] sm:$0xff] }
  0x61   :  { %372 = vmatpush.bf16.msra.mxu1 %v1289_v12  ;;  %v1339_v12 = vld [vmem:[#allocation13 + $0x18] sm:$0xff] }
  0x62   :  { %613 = vmatpush.bf16.msrb.mxu0 %v1306_v41  ;;  %v1348_v41 = vld [vmem:[#allocation14 + $0x20] sm:$0xff] }
  0x63   :  { %552 = vmatpush.bf16.msra.mxu3 %v1314_v50 }
  0x64   :  { %457 = vmatpush.bf16.msra.mxu2 %v1297_v28 }
  0x65   :  { %373 = vmatpush.bf16.msra.mxu1 %v1288_v13  ;;  %v1338_v13 = vld [vmem:[#allocation13 + $0x10] sm:$0xff] }
  0x66   :  { %614 = vmatpush.bf16.msrb.mxu0 %v1305_v43  ;;  %v1347_v43 = vld [vmem:[#allocation14 + $0x18] sm:$0xff] }
  0x67   :  { %553 = vmatpush.bf16.msra.mxu3 %v1313_v52 }
  0x68   :  { %458 = vmatpush.bf16.msra.mxu2 %v1296_v29 }
  0x69   :  { %696 = vmatpush.bf16.msrb.mxu1 %v1327_v57 }
  0x6a   :  { %615 = vmatpush.bf16.msrb.mxu0 %v1304_v51 }
  0x6b   :  { %554 = vmatpush.bf16.msra.mxu3 %v1312_v53  ;;  %v1374_v53 = vld [vmem:[%s1980_s12] ss:$0 sm:$0xff] }
  0x6c   :  { %779 = vmatpush.bf16.msrb.mxu2 %v1335_v17 }
  0x6d   :  { %697 = vmatpush.bf16.msrb.mxu1 %v1326_v58 }
  0x6e   :  { %889 = vmatpush.bf16.msra.mxu0 %v1343_v4 }
  0x6f   :  { %813 = vmatpush.bf16.msrb.mxu3 %v804_v55 }
  0x71   :  { %698 = vmatpush.bf16.msrb.mxu1 %v1325_v2 }
  0x72   :  { %890 = vmatpush.bf16.msra.mxu0 %v1342_v6 }
  0x75   :  { %699 = vmatpush.bf16.msrb.mxu1 %v1324_v3 }
  0x76   :  { %891 = vmatpush.bf16.msra.mxu0 %v1341_v8 }
  0x79   :  { %700 = vmatpush.bf16.msrb.mxu1 %v1323_v5 }
  0x7a   :  { %892 = vmatpush.bf16.msra.mxu0 %v1340_v10 }
  0x7d   :  { %701 = vmatpush.bf16.msrb.mxu1 %v1322_v7 }
  0x7e   :  { %893 = vmatpush.bf16.msra.mxu0 %v1339_v12 }
  0x81   :  { %702 = vmatpush.bf16.msrb.mxu1 %v1321_v9 }
  0x82   :  { %894 = vmatpush.bf16.msra.mxu0 %v1338_v13 }
  0x85   :  { %703 = vmatpush.bf16.msrb.mxu1 %v1320_v11 }
  0x86   :  { %895 = vmatpush.bf16.msra.mxu0 %v1337_v14 }
  0x8a   :  { %896 = vmatpush.bf16.msra.mxu0 %v1336_v16 }
  0xca   :  { %v290_v18 = vpop.f32.mrf.mxu0 }
  0xcb   :  { %v291_v20 = vadd.f32 %v1368_v19, %v290_v18  ;;  %v1351_v18 = vld [vmem:[#allocation14 + $0x38] sm:$0xff] }
  0xcd   :  { %v295_v23 = vmax.f32 %v291_v20, 0.0  ;;  %v1334_v20 = vld [vmem:[#allocation20 + $0x30] sm:$0xff] }
  0xce   :  { %780 = vmatpush.bf16.msrb.mxu2 %v1334_v20 }
  0xd2   :  { %v292_v21 = vpop.f32.mrf.mxu0 }
  0xd3   :  { %v293_v22 = vadd.f32 %v1368_v19, %v292_v21  ;;  %v1350_v21 = vld [vmem:[#allocation14 + $0x30] sm:$0xff] }
  0xd5   :  { %v296_v24 = vmax.f32 %v293_v22, 0.0  ;;  %v1333_v22 = vld [vmem:[#allocation20 + $0x28] sm:$0xff] }
  0xd6   :  { %781 = vmatpush.bf16.msrb.mxu2 %v1333_v22 }
  0xd7   :  { %v297_v25 = vpack.c.bf16 %v296_v24, %v295_v23  ;;  %v1371_v23 = vld [vmem:[%s1985_s17] ss:$0 sm:$0xff] }
  0xd8   :  { %v1349_v24 = vld [vmem:[#allocation14 + $0x28] sm:$0xff] }
  0xd9   :  { %374 = vmatmul.bf16.vlgmr.msra.gmra.mxu1 %v297_v25 }
  0xda   :  { %782 = vmatpush.bf16.msrb.mxu2 %v1332_v27 }
  0xde   :  { %783 = vmatpush.bf16.msrb.mxu2 %v1331_v30 }
  0xe2   :  { %784 = vmatpush.bf16.msrb.mxu2 %v1330_v33 }
 0x156   :  { %v375_v40 = vpop.f32.mrf.mxu1 }
 0x157   :  { %v376_v44 = vadd.f32 %v1369_v42, %v375_v40  ;;  %v1329_v40 = vld [vmem:[#allocation20 + $0x8] sm:$0xff] }
 0x158   :  { %785 = vmatpush.bf16.msrb.mxu2 %v1329_v40 }
 0x159   :  { %v380_v47 = vmax.f32 %v376_v44, 0.0  ;;  %v1346_v44 = vld [vmem:[#allocation14 + $0x10] sm:$0xff] }
 0x15e   :  { %v377_v45 = vpop.f32.mrf.mxu1 }
 0x15f   :  { %v378_v46 = vadd.f32 %v1369_v42, %v377_v45  ;;  %v1328_v42 = vld [vmem:[#allocation20] sm:$0xff]  ;;  %v1345_v45 = vld [vmem:[#allocation14 + $0x8] sm:$0xff] }
 0x160   :  { %786 = vmatpush.bf16.msrb.mxu2 %v1328_v42 }
 0x161   :  { %v381_v48 = vmax.f32 %v378_v46, 0.0  ;;  %v1344_v46 = vld [vmem:[#allocation14] sm:$0xff] }
 0x163   :  { %v382_v49 = vpack.c.bf16 %v381_v48, %v380_v47  ;;  %v1373_v47 = vld [vmem:[%s1987_s19] ss:$0 sm:$0xff]  ;;  %s1745_s19 = smov [#allocation23]  }
 0x164   :  { %s1002_s0 = sshll.u32 %s1745_s19, 4  ;;  %s1003_s0 = int_to_ptr.vmem [resolvable:$true] %s1002_s0 }
 0x165   :  { %459 = vmatmul.bf16.vlgmr.msra.gmra.mxu2 %v382_v49 }
 0x1e8   :  { %v460_v59 = vpop.f32.mrf.mxu2 }
 0x1e9   :  { %v461_v60 = vadd.f32 %v1370_v56, %v460_v59  ;;  %v1375_v59 = vld [vmem:[%s1989_s21] ss:$0 sm:$0xff] }
 0x1eb   :  { %v465_v61 = vpack.c.bf16 %v461_v60, %v461_v60 }
 0x1ed   :  { %616 = vmatmul.bf16.vlgmr.msrb.gmra.mxu0 %v465_v61 }
 0x1f0   :  { %v462_v62 = vpop.f32.mrf.mxu2 }
 0x1f1   :  { %v463_v63 = vadd.f32 %v1370_v56, %v462_v62 }
 0x1f3   :  { %v482_v0 = vpack.c.bf16 %v463_v63, %v463_v63  ;;  %v1376_v63 = vld [vmem:[%s1982_s14] ss:$0 sm:$0xff] }
 0x1f5   :  { %555 = vmatmul.bf16.vlgmr.msra.gmra.mxu3 %v482_v0 }
 0x1f6   :  { %972 = vmatpush.bf16.msra.mxu3 %v1351_v18 }
 0x1fa   :  { %973 = vmatpush.bf16.msra.mxu3 %v1350_v21 }
 0x1fe   :  { %974 = vmatpush.bf16.msra.mxu3 %v1349_v24 }
 0x202   :  { %975 = vmatpush.bf16.msra.mxu3 %v1348_v41 }
 0x205   :  { %1222 = vmatmul.msk.bf16.vlgmr.msrb.gmra.mxu3 %vm799_vm2, %v793_v1 }
 0x206   :  { %976 = vmatpush.bf16.msra.mxu3 %v1347_v43 }
 0x20a   :  { %977 = vmatpush.bf16.msra.mxu3 %v1346_v44 }
 0x20e   :  { %978 = vmatpush.bf16.msra.mxu3 %v1345_v45 }
 0x212   :  { %979 = vmatpush.bf16.msra.mxu3 %v1344_v46 }
 0x26a   :  { %v617_v15 = vpop.f32.mrf.mxu0 }
 0x272   :  { %v619_v19 = vpop.f32.mrf.mxu0 }
 0x278   :  { %v556_v25 = vpop.f32.mrf.mxu3 }
 0x279   :  { %v618_v26 = vadd.f32 %v617_v15, %v556_v25 }
 0x27b   :  { %v625_v28 = vadd.f32 %v1371_v23, %v618_v26 }
 0x27d   :  { %v626_v29 = vmax.f32 %v625_v28, 0.0 }
 0x27f   :  { %v627_v31 = vpack.c.bf16 %v626_v29, %v626_v29 }
 0x280   :  { %v558_v32 = vpop.f32.mrf.mxu3 }
 0x281   :  { %704 = vmatmul.bf16.vlgmr.msrb.gmra.mxu1 %v627_v31 }
 0x288   :  { %v815_v35 = vpop.f32.mrf.mxu3 }
 0x289   :  { %v816_v36 = vadd.f32 %v1372_v34, %v815_v35 }
 0x28b   :  { %v819_v37 = vmax.f32 %v816_v36, 0.0 }
 0x28d   :  { %v820_v38 = vpack.c.bf16 %v819_v37, %v819_v37 }
 0x28f   :  { %897 = vmatmul.bf16.vlgmr.msra.gmra.mxu0 %v820_v38 }
 0x290   :  { %v817_v39 = vpop.f32.mrf.mxu3 }
 0x2fe   :  { %v705_v48 = vpop.f32.mrf.mxu1 }
 0x2ff   :  { %v706_v49 = vadd.f32 %v1373_v47, %v705_v48 }
 0x301   :  { %v709_v50 = vmax.f32 %v706_v49, 0.0 }
 0x303   :  { %v710_v51 = vpack.c.bf16 %v709_v50, %v709_v50 }
 0x305   :  { %787 = vmatmul.bf16.vlgmr.msrb.gmra.mxu2 %v710_v51 }
 0x306   :  { %v707_v52 = vpop.f32.mrf.mxu1 }
 0x30c   :  { %v898_v54 = vpop.f32.mrf.mxu0 }
 0x30d   :  { %v899_v55 = vadd.f32 %v1374_v53, %v898_v54 }
 0x30f   :  { %v902_v56 = vmax.f32 %v899_v55, 0.0 }
 0x311   :  { %v903_v57 = vpack.c.bf16 %v902_v56, %v902_v56 }
 0x313   :  { %980 = vmatmul.bf16.vlgmr.msra.gmra.mxu3 %v903_v57 }
 0x314   :  { %v900_v58 = vpop.f32.mrf.mxu0 }
 0x388   :  { %v788_v60 = vpop.f32.mrf.mxu2 }
 0x389   :  { %v789_v61 = vadd.f32 %v1375_v59, %v788_v60 }
 0x38b   :  { %792 = vst [vmem:[#allocation23] sm:$0xff] %v789_v61 }
 0x38c   :  { %1007 = dma.vmem_to_hbm [thread:$0]  %s1003_s0, 128, %s1005_s28, [#allocation24]  }
 0x390   :  { %v790_v62 = vpop.f32.mrf.mxu2 }
 0x396   :  { %v981_v0 = vpop.f32.mrf.mxu3 }
 0x397   :  { %v982_v1 = vadd.f32 %v1376_v63, %v981_v0 }
 0x399   :  { %985 = vst [vmem:[#allocation22] sm:$0xff] %v982_v1 }
 0x39a   :  { %996 = dma.vmem_to_hbm [thread:$0]  %s992_s20, 128, %s994_s22, [#allocation4]  }
 0x39e   :  { %v983_v2 = vpop.f32.mrf.mxu3 }
 0x39f   :  { %1727 = dma.done.wait [#allocation4], 128  }
 0x3a0   :  { %1728 = vsyncadd [#allocation4], 4294967168 }
 0x3a1   :  { %1729 = dma.done.wait [#allocation24], 128  }
 0x3a2   :  { %1730 = vsyncadd [#allocation24], 4294967168 }
 0x3a3   :  { %1016 = vsyncpa [#allocation3], 1 }
 0x3a4   :  { %1017 = vsyncpa [#allocation6], 1 }
 0x3a5   :  { %1018 = vsyncpa [#allocation9], 1 }
 0x3a6   :  { %1019 = vsyncpa [#allocation12], 1 }
 0x3a7   :  { %1020 = vsyncpa [#allocation15], 1 }
 0x3a8   :  { %1021 = vsyncpa [#allocation18], 1 }
 0x3a9   :  { %1022 = vsyncpa [#allocation21], 1 }
 0x3aa   :  { %1023 = vsyncpa [#allocation4], 1 }
 0x3ab   :  { %1024 = vsyncpa [#allocation24], 1 }

// kernel: tpu_custom_call.1
= control target key start
LH: loop header
LB: loop body
LE: loop exit
PB: predicated region body
PF: predicated region fallthrough
CT: control target
= control target key end

     0   :  { %s1968_s0 = inlined_call_operand.hbm [shape: bf16[8,16], index: 0, kind: input, shape index: {}]   ;;  %s1969_s1 = inlined_call_operand.hbm [shape: bf16[8,16], index: 1, kind: input, shape index: {}]   ;;  %s1970_s2 = inlined_call_operand.hbm [shape: bf16[8,8], index: 2, kind: input, shape index: {}]   ;;  %s1971_s3 = inlined_call_operand.hbm [shape: bf16[16,128], index: 3, kind: input, shape index: {}]   ;;  %s1972_s4 = inlined_call_operand.vmem [shape: f32[1,128], index: 4, kind: input, shape index: {}]   ;;  %s1973_s5 = inlined_call_operand.hbm [shape: bf16[128,128], index: 5, kind: input, shape index: {}]   ;;  %s1974_s6 = inlined_call_operand.vmem [shape: f32[1,128], index: 6, kind: input, shape index: {}]   ;;  %s1975_s7 = inlined_call_operand.hbm [shape: bf16[128,128], index: 7, kind: input, shape index: {}]   ;;  %s1976_s8 = inlined_call_operand.vmem [shape: f32[1,128], index: 8, kind: input, shape index: {}]   ;;  %s1977_s9 = inlined_call_operand.vmem [shape: bf16[8,128], index: 9, kind: input, shape index: {}]   ;;  %s1978_s10 = inlined_call_operand.vmem [shape: f32[1,128], index: 10, kind: input, shape index: {}]   ;;  %s1979_s11 = inlined_call_operand.hbm [shape: bf16[128,128], index: 11, kind: input, shape index: {}]   ;;  %s1980_s12 = inlined_call_operand.vmem [shape: f32[1,128], index: 12, kind: input, shape index: {}]   ;;  %s1981_s13 = inlined_call_operand.hbm [shape: bf16[128,128], index: 13, kind: input, shape index: {}]   ;;  %s1982_s14 = inlined_call_operand.vmem [shape: f32[1,128], index: 14, kind: input, shape index: {}]   ;;  %s1983_s15 = inlined_call_operand.hbm [shape: bf16[128,128], index: 15, kind: input, shape index: {}]   ;;  %s1984_s16 = inlined_call_operand.hbm [shape: bf16[128,128], index: 16, kind: input, shape index: {}]   ;;  %s1985_s17 = inlined_call_operand.vmem [shape: f32[1,128], index: 17, kind: input, shape index: {}]   ;;  %s1986_s18 = inlined_call_operand.hbm [shape: bf16[128,128], index: 18, kind: input, shape index: {}]   ;;  %s1987_s19 = inlined_call_operand.vmem [shape: f32[1,128], index: 19, kind: input, shape index: {}]   ;;  %s1988_s20 = inlined_call_operand.hbm [shape: bf16[128,128], index: 20, kind: input, shape index: {}]   ;;  %s1989_s21 = inlined_call_operand.vmem [shape: f32[1,128], index: 21, kind: input, shape index: {}]   ;;  %s1990_s22 = inlined_call_operand.hbm [shape: f32[8,128], index: 22, kind: output, shape index: {0}]   ;;  %s1991_s23 = inlined_call_operand.hbm [shape: f32[8,128], index: 23, kind: output, shape index: {1}]  }
   0x1   :  { %1994 = sst [smem:[#allocation34_spill]] %s1968_s0 }
   0x2   :  { %1995 = sst [smem:[#allocation35_spill]] %s1969_s1 }
   0x3   :  { %1996 = sst [smem:[#allocation36_spill]] %s1970_s2 }
   0x4   :  { %1997 = sst [smem:[#allocation37_spill]] %s1971_s3 }
   0x5   :  { %1998 = sst [smem:[#allocation38_spill]] %s1972_s4 }
   0x6   :  { %1999 = sst [smem:[#allocation39_spill]] %s1973_s5 }
   0x7   :  { %2000 = sst [smem:[#allocation40_spill]] %s1974_s6 }
   0x8   :  { %2001 = sst [smem:[#allocation41_spill]] %s1975_s7 }
   0x9   :  { %2002 = sst [smem:[#allocation42_spill]] %s1990_s22 }
   0xa   :  { %29 = vsyncpa [#allocation3], 0 }
   0xb   :  { %30 = vsyncpa [#allocation6], 0 }
   0xc   :  { %31 = vsyncpa [#allocation9], 0 }
   0xd   :  { %32 = vsyncpa [#allocation12], 0 }
   0xe   :  { %33 = vsyncpa [#allocation15], 0 }
   0xf   :  { %34 = vsyncpa [#allocation18], 0 }
  0x10   :  { %35 = vsyncpa [#allocation21], 0 }
  0x11   :  { %36 = vsyncpa [#allocation4], 0  ;;  %s2003_s24 = sld [smem:[#allocation35_spill]] }
  0x17   :  { %s54_s25 = sshll.u32 %s2003_s24, 4  ;;  %s55_s25 = int_to_ptr.hbm [resolvable:$true] %s54_s25 }
  0x18   :  { %37 = vsyncpa [#allocation24], 0  ;;  %s1731_s5 = smov [#allocation5]   ;;  %s2004_s6 = sld [smem:[#allocation37_spill]] }
  0x19   :  { %s56_s1 = sshll.u32 %s1731_s5, 4  ;;  %s1732_s7 = smov [#allocation8]   ;;  %s57_s1 = int_to_ptr.vmem [resolvable:$true] %s56_s1 }
  0x1a   :  { %59 = dma.hbm_to_vmem [thread:$0]  %s55_s25, 64, %s57_s1, [#allocation6]  }
  0x1b   :  { %s77_s28 = sshll.u32 %s1732_s7, 4  ;;  %s1992_s29 = smov 64   ;;  %s78_s28 = int_to_ptr.vmem [resolvable:$true] %s77_s28 }
  0x1c   :  { %s1734_s3 = smov 4   ;;  %s2005_s30 = sld [smem:[#allocation41_spill]] }
  0x1d   :  { %s1735_s5 = smov [#allocation11]   ;;  %s139_s1 = sshll.u32 %s1981_s13, 4  ;;  %s140_s1 = int_to_ptr.hbm [resolvable:$true] %s139_s1 }
  0x1e   :  { %s75_s27 = sshll.u32 %s2004_s6, 4  ;;  %s107_s22 = sshll.u32 %s1735_s5, 4  ;;  %s76_s27 = int_to_ptr.hbm [resolvable:$true] %s75_s27  ;;  %s108_s22 = int_to_ptr.vmem [resolvable:$true] %s107_s22 }
  0x1f   :  { %83 = dma.hbm_to_vmem [thread:$0]  %s76_s27, 128, %s78_s28, [#allocation9], %s1992_s29, %s1992_s29, %s1734_s3  }
  0x20   :  { %s1736_s2 = smov [#allocation14]   ;;  %s167_s28 = sshll.u32 %s1984_s16, 4  ;;  %s168_s28 = int_to_ptr.hbm [resolvable:$true] %s167_s28 }
  0x21   :  { %s141_s6 = sshll.u32 %s1736_s2, 4  ;;  %s2006_s13 = sld [smem:[#allocation34_spill]]  ;;  %s142_s6 = int_to_ptr.vmem [resolvable:$true] %s141_s6 }
  0x22   :  { %s105_s24 = sshll.u32 %s2005_s30, 4  ;;  %s1737_s5 = smov [#allocation17]   ;;  %s106_s24 = int_to_ptr.hbm [resolvable:$true] %s105_s24 }
  0x23   :  { %113 = dma.hbm_to_vmem [thread:$0]  %s106_s24, 1024, %s108_s22, [#allocation12], %s1992_s29, %s1992_s29, %s1734_s3  }
  0x24   :  { %147 = dma.hbm_to_vmem [thread:$0]  %s140_s1, 1024, %s142_s6, [#allocation15], %s1992_s29, %s1992_s29, %s1734_s3  }
  0x25   :  { %s169_s26 = sshll.u32 %s1737_s5, 4  ;;  %s1738_s22 = smov [#allocation2]   ;;  %s170_s26 = int_to_ptr.vmem [resolvable:$true] %s169_s26 }
  0x26   :  { %175 = dma.hbm_to_vmem [thread:$0]  %s168_s28, 1024, %s170_s26, [#allocation18], %s1992_s29, %s1992_s29, %s1734_s3  }
  0x27   :  { %s43_s30 = sshll.u32 %s2006_s13, 4  ;;  %s45_s16 = sshll.u32 %s1738_s22, 4  ;;  %s44_s30 = int_to_ptr.hbm [resolvable:$true] %s43_s30  ;;  %s46_s16 = int_to_ptr.vmem [resolvable:$true] %s45_s16 }
  0x28   :  { %s2007_s2 = sld [smem:[#allocation36_spill]]  ;;  %s1739_s4 = smov [#allocation7]  }
  0x29   :  { %48 = dma.hbm_to_vmem [thread:$0]  %s44_s30, 64, %s46_s16, [#allocation3]  }
  0x2a   :  { %s2008_s7 = sld [smem:[#allocation39_spill]]  ;;  %s67_s13 = sshll.u32 %s1739_s4, 4  ;;  %s68_s13 = int_to_ptr.vmem [resolvable:$true] %s67_s13 }
  0x2b   :  { %s1740_s5 = smov [#allocation10]   ;;  %s124_s29 = sshll.u32 %s1979_s11, 4  ;;  %s125_s29 = int_to_ptr.hbm [resolvable:$true] %s124_s29 }
  0x2c   :  { %s92_s28 = sshll.u32 %s1740_s5, 4  ;;  %s2009_s24 = smov 64   ;;  %s93_s28 = int_to_ptr.vmem [resolvable:$true] %s92_s28 }
  0x2d   :  { %s154_s25 = sshll.u32 %s1983_s15, 4  ;;  %s182_s4 = sshll.u32 %s1986_s18, 4  ;;  %s155_s25 = int_to_ptr.hbm [resolvable:$true] %s154_s25  ;;  %s183_s4 = int_to_ptr.hbm [resolvable:$true] %s182_s4 }
  0x2e   :  { %s65_s27 = sshll.u32 %s2007_s2, 4  ;;  %s1741_s2 = smov [#allocation13]   ;;  %s66_s27 = int_to_ptr.hbm [resolvable:$true] %s65_s27 }
  0x2f   :  { %70 = dma.hbm_to_vmem [thread:$0]  %s66_s27, 64, %s68_s13, [#allocation6]  }
  0x30   :  { %s90_s0 = sshll.u32 %s2008_s7, 4  ;;  %s126_s1 = sshll.u32 %s1741_s2, 4  ;;  %s91_s0 = int_to_ptr.hbm [resolvable:$true] %s90_s0  ;;  %s127_s1 = int_to_ptr.vmem [resolvable:$true] %s126_s1 }
  0x31   :  { %98 = dma.hbm_to_vmem [thread:$0]  %s91_s0, 1024, %s93_s28, [#allocation9], %s2009_s24, %s2009_s24, %s1734_s3  }
  0x32   :  { %132 = dma.hbm_to_vmem [thread:$0]  %s125_s29, 1024, %s127_s1, [#allocation12], %s2009_s24, %s2009_s24, %s1734_s3  }
  0x33   :  { %s1742_s27 = smov [#allocation16]   ;;  %s197_s13 = sshll.u32 %s1988_s20, 4  ;;  %s198_s13 = int_to_ptr.hbm [resolvable:$true] %s197_s13 }
  0x34   :  { %s156_s11 = sshll.u32 %s1742_s27, 4  ;;  %s1743_s5 = smov [#allocation19]   ;;  %s157_s11 = int_to_ptr.vmem [resolvable:$true] %s156_s11 }
  0x35   :  { %162 = dma.hbm_to_vmem [thread:$0]  %s155_s25, 1024, %s157_s11, [#allocation15], %s2009_s24, %s2009_s24, %s1734_s3  }
  0x36   :  { %s184_s28 = sshll.u32 %s1743_s5, 4  ;;  %s1744_s29 = smov [#allocation20]   ;;  %s185_s28 = int_to_ptr.vmem [resolvable:$true] %s184_s28 }
  0x37   :  { %190 = dma.hbm_to_vmem [thread:$0]  %s183_s4, 1024, %s185_s28, [#allocation18], %s2009_s24, %s2009_s24, %s1734_s3  }
  0x38   :  { %s199_s18 = sshll.u32 %s1744_s29, 4  ;;  %s200_s18 = int_to_ptr.vmem [resolvable:$true] %s199_s18 }
  0x39   :  { %205 = dma.hbm_to_vmem [thread:$0]  %s198_s13, 1024, %s200_s18, [#allocation21], %s2009_s24, %s2009_s24, %s1734_s3  }
  0x3a   :  { %1713 = dma.done.wait [#allocation3], 64  }
  0x3b   :  { %1714 = vsyncadd [#allocation3], 4294967232 }
  0x3c   :  { %1715 = dma.done.wait [#allocation6], 128  }
  0x3d   :  { %1716 = vsyncadd [#allocation6], 4294967168 }
  0x3e   :  { %1717 = dma.done.wait [#allocation9], 1152  }
  0x3f   :  { %1718 = vsyncadd [#allocation9], 4294966144 }
  0x40   :  { %1719 = dma.done.wait [#allocation12], 2048  }
  0x41   :  { %1720 = vsyncadd [#allocation12], 4294965248 }
  0x42   :  { %1721 = dma.done.wait [#allocation15], 2048  }
  0x43   :  { %1722 = vsyncadd [#allocation15], 4294965248 }
  0x44   :  { %1723 = dma.done.wait [#allocation18], 2048  }
  0x45   :  { %1724 = vsyncadd [#allocation18], 4294965248 }
  0x46   :  { %1725 = dma.done.wait [#allocation21], 1024  }
  0x47   :  { %1726 = vsyncadd [#allocation21], 4294966272  ;;  %v1287_v0 = vld [vmem:[#allocation8] sm:$0xff]  ;;  %v258_v1 = vld [vmem:[#allocation5] sm:$0xf]  ;;  %vm262_vm0 = vcmask 1043456  }
  0x48   :  { %v260_v2 = vunpack.c.l.b16 %v258_v1  ;;  %v1295_v3 = vld [vmem:[#allocation10 + $0x38] sm:$0xff]  ;;  %288 = vmatpush.bf16.msra.mxu0 %v1287_v0  ;;  %v257_v4 = vld [vmem:[#allocation2] sm:$0xf]  ;;  %vm278_vm1 = vcmask 130048   ;;  %v1294_v5 = vld [vmem:[#allocation10 + $0x30] sm:$0xff]  ;;  %s2010_s26 = sld [smem:[#allocation38_spill]] }
  0x49   :  { %366 = vmatpush.bf16.msra.mxu1 %v1295_v3  ;;  %v1293_v8 = vld [vmem:[#allocation10 + $0x28] sm:$0xff]  ;;  %v1292_v9 = vld [vmem:[#allocation10 + $0x20] sm:$0xff]  ;;  %v1291_v10 = vld [vmem:[#allocation10 + $0x18] sm:$0xff]  ;;  %s2011_s30 = sld [smem:[#allocation40_spill]]  ;;  %vm799_vm2 = vcmask 64512   ;;  %s1004_s28 = sshll.u32 %s1991_s23, 4  ;;  %s1005_s28 = int_to_ptr.hbm [resolvable:$true] %s1004_s28 }
  0x4a   :  { %v261_v6 = vpack.c.b16 %v260_v2, %v260_v2  ;;  %v1290_v11 = vld [vmem:[#allocation10 + $0x10] sm:$0xff]  ;;  %v1289_v12 = vld [vmem:[#allocation10 + $0x8] sm:$0xff]  ;;  %v1288_v13 = vld [vmem:[#allocation10] sm:$0xff]  ;;  %s1746_s18 = smov [#allocation22]  }
  0x4b   :  { %v1303_v14 = vld [vmem:[#allocation11 + $0x38] sm:$0xff]  ;;  %v1302_v15 = vld [vmem:[#allocation11 + $0x30] sm:$0xff]  ;;  %v1301_v16 = vld [vmem:[#allocation11 + $0x28] sm:$0xff]  ;;  %s991_s20 = sshll.u32 %s1746_s18, 4  ;;  %s992_s20 = int_to_ptr.vmem [resolvable:$true] %s991_s20 }
  0x4c   :  { %v265_v7 = vsel %vm262_vm0, %v257_v4, %v261_v6  ;;  %451 = vmatpush.bf16.msra.mxu2 %v1303_v14  ;;  %v1300_v17 = vld [vmem:[#allocation11 + $0x20] sm:$0xff]  ;;  %v1299_v26 = vld [vmem:[#allocation11 + $0x18] sm:$0xff]  ;;  %v1298_v27 = vld [vmem:[#allocation11 + $0x10] sm:$0xff] }
  0x4d   :  { %1029 = vmatmul.msk.bf16.vlgmr.msra.gmra.mxu0 %vm278_vm1, %v265_v7  ;;  %367 = vmatpush.bf16.msra.mxu1 %v1294_v5  ;;  %v1297_v28 = vld [vmem:[#allocation11 + $0x8] sm:$0xff]  ;;  %v1296_v29 = vld [vmem:[#allocation11] sm:$0xff]  ;;  %v1311_v30 = vld [vmem:[#allocation16 + $0x38] sm:$0xff] }
  0x4e   :  { %v1368_v19 = vld [vmem:[%s2010_s26] ss:$0 sm:$0xff]  ;;  %v1319_v31 = vld [vmem:[#allocation17 + $0x38] sm:$0xff]  ;;  %608 = vmatpush.bf16.msrb.mxu0 %v1311_v30  ;;  %v1310_v32 = vld [vmem:[#allocation16 + $0x30] sm:$0xff]  ;;  %s2012_s26 = sld [smem:[#allocation42_spill]] }
  0x4f   :  { %547 = vmatpush.bf16.msra.mxu3 %v1319_v31  ;;  %v1318_v33 = vld [vmem:[#allocation17 + $0x30] sm:$0xff]  ;;  %v1309_v34 = vld [vmem:[#allocation16 + $0x28] sm:$0xff]  ;;  %v1308_v36 = vld [vmem:[#allocation16 + $0x20] sm:$0xff] }
  0x50   :  { %452 = vmatpush.bf16.msra.mxu2 %v1302_v15  ;;  %v1317_v35 = vld [vmem:[#allocation17 + $0x28] sm:$0xff]  ;;  %v1316_v37 = vld [vmem:[#allocation17 + $0x20] sm:$0xff]  ;;  %v1307_v38 = vld [vmem:[#allocation16 + $0x18] sm:$0xff] }
  0x51   :  { %368 = vmatpush.bf16.msra.mxu1 %v1293_v8  ;;  %v1315_v39 = vld [vmem:[#allocation17 + $0x18] sm:$0xff]  ;;  %v1306_v41 = vld [vmem:[#allocation16 + $0x10] sm:$0xff]  ;;  %v1369_v42 = vld [vmem:[%s2011_s30] ss:$0 sm:$0xff] }
  0x52   :  { %609 = vmatpush.bf16.msrb.mxu0 %v1310_v32  ;;  %v1305_v43 = vld [vmem:[#allocation16 + $0x8] sm:$0xff]  ;;  %v1314_v50 = vld [vmem:[#allocation17 + $0x10] sm:$0xff]  ;;  %v1304_v51 = vld [vmem:[#allocation16] sm:$0xff] }
  0x53   :  { %548 = vmatpush.bf16.msra.mxu3 %v1318_v33  ;;  %v1313_v52 = vld [vmem:[#allocation17 + $0x8] sm:$0xff]  ;;  %v1312_v53 = vld [vmem:[#allocation17] sm:$0xff]  ;;  %v1327_v57 = vld [vmem:[#allocation19 + $0x38] sm:$0xff] }
  0x54   :  { %453 = vmatpush.bf16.msra.mxu2 %v1301_v16  ;;  %v794_v54 = vld [vmem:[%s1977_s9] sm:$0xf]  ;;  %v1326_v58 = vld [vmem:[#allocation19 + $0x30] sm:$0xff]  ;;  %v1324_v3 = vld [vmem:[#allocation19 + $0x20] sm:$0xff]  ;;  %s993_s22 = sshll.u32 %s2012_s26, 4  ;;  %s994_s22 = int_to_ptr.hbm [resolvable:$true] %s993_s22 }
  0x55   :  { %369 = vmatpush.bf16.msra.mxu1 %v1292_v9  ;;  %v804_v55 = vsel %vm262_vm0, %v794_v54, 0  ;;  %v1370_v56 = vld [vmem:[%s1976_s8] ss:$0 sm:$0xff]  ;;  %v793_v1 = vld [vmem:[#allocation7] sm:$0xf]  ;;  %v1343_v4 = vld [vmem:[#allocation13 + $0x38] sm:$0xff] }
  0x56   :  { %610 = vmatpush.bf16.msrb.mxu0 %v1309_v34  ;;  %v1325_v2 = vld [vmem:[#allocation19 + $0x28] sm:$0xff]  ;;  %v1323_v5 = vld [vmem:[#allocation19 + $0x18] sm:$0xff]  ;;  %v1342_v6 = vld [vmem:[#allocation13 + $0x30] sm:$0xff] }
  0x57   :  { %549 = vmatpush.bf16.msra.mxu3 %v1317_v35  ;;  %v1322_v7 = vld [vmem:[#allocation19 + $0x10] sm:$0xff]  ;;  %v1341_v8 = vld [vmem:[#allocation13 + $0x28] sm:$0xff]  ;;  %v1336_v16 = vld [vmem:[#allocation13] sm:$0xff] }
  0x58   :  { %454 = vmatpush.bf16.msra.mxu2 %v1300_v17  ;;  %v1321_v9 = vld [vmem:[#allocation19 + $0x8] sm:$0xff]  ;;  %v1335_v17 = vld [vmem:[#allocation20 + $0x38] sm:$0xff]  ;;  %v1330_v33 = vld [vmem:[#allocation20 + $0x10] sm:$0xff] }
  0x59   :  { %370 = vmatpush.bf16.msra.mxu1 %v1291_v10  ;;  %v1340_v10 = vld [vmem:[#allocation13 + $0x20] sm:$0xff]  ;;  %v1337_v14 = vld [vmem:[#allocation13 + $0x8] sm:$0xff]  ;;  %v1331_v30 = vld [vmem:[#allocation20 + $0x18] sm:$0xff] }
  0x5a   :  { %611 = vmatpush.bf16.msrb.mxu0 %v1308_v36  ;;  %v1372_v34 = vld [vmem:[%s1978_s10] ss:$0 sm:$0xff] }
  0x5b   :  { %550 = vmatpush.bf16.msra.mxu3 %v1316_v37 }
  0x5c   :  { %455 = vmatpush.bf16.msra.mxu2 %v1299_v26 }
  0x5d   :  { %371 = vmatpush.bf16.msra.mxu1 %v1290_v11  ;;  %v1320_v11 = vld [vmem:[#allocation19] sm:$0xff] }
  0x5e   :  { %612 = vmatpush.bf16.msrb.mxu0 %v1307_v38 }
  0x5f   :  { %551 = vmatpush.bf16.msra.mxu3 %v1315_v39 }
  0x60   :  { %456 = vmatpush.bf16.msra.mxu2 %v1298_v27  ;;  %v1332_v27 = vld [vmem:[#allocation20 + $0x20] sm:$0xff] }
  0x61   :  { %372 = vmatpush.bf16.msra.mxu1 %v1289_v12  ;;  %v1339_v12 = vld [vmem:[#allocation13 + $0x18] sm:$0xff] }
  0x62   :  { %613 = vmatpush.bf16.msrb.mxu0 %v1306_v41  ;;  %v1348_v41 = vld [vmem:[#allocation14 + $0x20] sm:$0xff] }
  0x63   :  { %552 = vmatpush.bf16.msra.mxu3 %v1314_v50 }
  0x64   :  { %457 = vmatpush.bf16.msra.mxu2 %v1297_v28 }
  0x65   :  { %373 = vmatpush.bf16.msra.mxu1 %v1288_v13  ;;  %v1338_v13 = vld [vmem:[#allocation13 + $0x10] sm:$0xff] }
  0x66   :  { %614 = vmatpush.bf16.msrb.mxu0 %v1305_v43  ;;  %v1347_v43 = vld [vmem:[#allocation14 + $0x18] sm:$0xff] }
  0x67   :  { %553 = vmatpush.bf16.msra.mxu3 %v1313_v52 }
  0x68   :  { %458 = vmatpush.bf16.msra.mxu2 %v1296_v29 }
  0x69   :  { %696 = vmatpush.bf16.msrb.mxu1 %v1327_v57 }
  0x6a   :  { %615 = vmatpush.bf16.msrb.mxu0 %v1304_v51 }
  0x6b   :  { %554 = vmatpush.bf16.msra.mxu3 %v1312_v53  ;;  %v1374_v53 = vld [vmem:[%s1980_s12] ss:$0 sm:$0xff] }
  0x6c   :  { %779 = vmatpush.bf16.msrb.mxu2 %v1335_v17 }
  0x6d   :  { %697 = vmatpush.bf16.msrb.mxu1 %v1326_v58 }
  0x6e   :  { %889 = vmatpush.bf16.msra.mxu0 %v1343_v4 }
  0x6f   :  { %813 = vmatpush.bf16.msrb.mxu3 %v804_v55 }
  0x71   :  { %698 = vmatpush.bf16.msrb.mxu1 %v1325_v2 }
  0x72   :  { %890 = vmatpush.bf16.msra.mxu0 %v1342_v6 }
  0x75   :  { %699 = vmatpush.bf16.msrb.mxu1 %v1324_v3 }
  0x76   :  { %891 = vmatpush.bf16.msra.mxu0 %v1341_v8 }
  0x79   :  { %700 = vmatpush.bf16.msrb.mxu1 %v1323_v5 }
  0x7a   :  { %892 = vmatpush.bf16.msra.mxu0 %v1340_v10 }
  0x7d   :  { %701 = vmatpush.bf16.msrb.mxu1 %v1322_v7 }
  0x7e   :  { %893 = vmatpush.bf16.msra.mxu0 %v1339_v12 }
  0x81   :  { %702 = vmatpush.bf16.msrb.mxu1 %v1321_v9 }
  0x82   :  { %894 = vmatpush.bf16.msra.mxu0 %v1338_v13 }
  0x85   :  { %703 = vmatpush.bf16.msrb.mxu1 %v1320_v11 }
  0x86   :  { %895 = vmatpush.bf16.msra.mxu0 %v1337_v14 }
  0x8a   :  { %896 = vmatpush.bf16.msra.mxu0 %v1336_v16 }
  0xca   :  { %v290_v18 = vpop.f32.mrf.mxu0 }
  0xcb   :  { %v291_v20 = vadd.f32 %v1368_v19, %v290_v18  ;;  %v1351_v18 = vld [vmem:[#allocation14 + $0x38] sm:$0xff] }
  0xcd   :  { %v295_v23 = vmax.f32 %v291_v20, 0.0  ;;  %v1334_v20 = vld [vmem:[#allocation20 + $0x30] sm:$0xff] }
  0xce   :  { %780 = vmatpush.bf16.msrb.mxu2 %v1334_v20 }
  0xd2   :  { %v292_v21 = vpop.f32.mrf.mxu0 }
  0xd3   :  { %v293_v22 = vadd.f32 %v1368_v19, %v292_v21  ;;  %v1350_v21 = vld [vmem:[#allocation14 + $0x30] sm:$0xff] }
  0xd5   :  { %v296_v24 = vmax.f32 %v293_v22, 0.0  ;;  %v1333_v22 = vld [vmem:[#allocation20 + $0x28] sm:$0xff] }
  0xd6   :  { %781 = vmatpush.bf16.msrb.mxu2 %v1333_v22 }
  0xd7   :  { %v297_v25 = vpack.c.bf16 %v296_v24, %v295_v23  ;;  %v1371_v23 = vld [vmem:[%s1985_s17] ss:$0 sm:$0xff] }
  0xd8   :  { %v1349_v24 = vld [vmem:[#allocation14 + $0x28] sm:$0xff] }
  0xd9   :  { %374 = vmatmul.bf16.vlgmr.msra.gmra.mxu1 %v297_v25 }
  0xda   :  { %782 = vmatpush.bf16.msrb.mxu2 %v1332_v27 }
  0xde   :  { %783 = vmatpush.bf16.msrb.mxu2 %v1331_v30 }
  0xe2   :  { %784 = vmatpush.bf16.msrb.mxu2 %v1330_v33 }
 0x156   :  { %v375_v40 = vpop.f32.mrf.mxu1 }
 0x157   :  { %v376_v44 = vadd.f32 %v1369_v42, %v375_v40  ;;  %v1329_v40 = vld [vmem:[#allocation20 + $0x8] sm:$0xff] }
 0x158   :  { %785 = vmatpush.bf16.msrb.mxu2 %v1329_v40 }
 0x159   :  { %v380_v47 = vmax.f32 %v376_v44, 0.0  ;;  %v1346_v44 = vld [vmem:[#allocation14 + $0x10] sm:$0xff] }
 0x15e   :  { %v377_v45 = vpop.f32.mrf.mxu1 }
 0x15f   :  { %v378_v46 = vadd.f32 %v1369_v42, %v377_v45  ;;  %v1328_v42 = vld [vmem:[#allocation20] sm:$0xff]  ;;  %v1345_v45 = vld [vmem:[#allocation14 + $0x8] sm:$0xff] }
 0x160   :  { %786 = vmatpush.bf16.msrb.mxu2 %v1328_v42 }
 0x161   :  { %v381_v48 = vmax.f32 %v378_v46, 0.0  ;;  %v1344_v46 = vld [vmem:[#allocation14] sm:$0xff] }
 0x163   :  { %v382_v49 = vpack.c.bf16 %v381_v48, %v380_v47  ;;  %v1373_v47 = vld [vmem:[%s1987_s19] ss:$0 sm:$0xff]  ;;  %s1745_s19 = smov [#allocation23]  }
 0x164   :  { %s1002_s0 = sshll.u32 %s1745_s19, 4  ;;  %s1003_s0 = int_to_ptr.vmem [resolvable:$true] %s1002_s0 }
 0x165   :  { %459 = vmatmul.bf16.vlgmr.msra.gmra.mxu2 %v382_v49 }
 0x1e8   :  { %v460_v59 = vpop.f32.mrf.mxu2 }
 0x1e9   :  { %v461_v60 = vadd.f32 %v1370_v56, %v460_v59  ;;  %v1375_v59 = vld [vmem:[%s1989_s21] ss:$0 sm:$0xff] }
 0x1eb   :  { %v465_v61 = vpack.c.bf16 %v461_v60, %v461_v60 }
 0x1ed   :  { %616 = vmatmul.bf16.vlgmr.msrb.gmra.mxu0 %v465_v61 }
 0x1f0   :  { %v462_v62 = vpop.f32.mrf.mxu2 }
 0x1f1   :  { %v463_v63 = vadd.f32 %v1370_v56, %v462_v62 }
 0x1f3   :  { %v482_v0 = vpack.c.bf16 %v463_v63, %v463_v63  ;;  %v1376_v63 = vld [vmem:[%s1982_s14] ss:$0 sm:$0xff] }
 0x1f5   :  { %555 = vmatmul.bf16.vlgmr.msra.gmra.mxu3 %v482_v0 }
 0x1f6   :  { %972 = vmatpush.bf16.msra.mxu3 %v1351_v18 }
 0x1fa   :  { %973 = vmatpush.bf16.msra.mxu3 %v1350_v21 }
 0x1fe   :  { %974 = vmatpush.bf16.msra.mxu3 %v1349_v24 }
 0x202   :  { %975 = vmatpush.bf16.msra.mxu3 %v1348_v41 }
 0x205   :  { %1222 = vmatmul.msk.bf16.vlgmr.msrb.gmra.mxu3 %vm799_vm2, %v793_v1 }
 0x206   :  { %976 = vmatpush.bf16.msra.mxu3 %v1347_v43 }
 0x20a   :  { %977 = vmatpush.bf16.msra.mxu3 %v1346_v44 }
 0x20e   :  { %978 = vmatpush.bf16.msra.mxu3 %v1345_v45 }
 0x212   :  { %979 = vmatpush.bf16.msra.mxu3 %v1344_v46 }
 0x26a   :  { %v617_v15 = vpop.f32.mrf.mxu0 }
 0x272   :  { %v619_v19 = vpop.f32.mrf.mxu0 }
 0x278   :  { %v556_v25 = vpop.f32.mrf.mxu3 }
 0x279   :  { %v618_v26 = vadd.f32 %v617_v15, %v556_v25 }
 0x27b   :  { %v625_v28 = vadd.f32 %v1371_v23, %v618_v26 }
 0x27d   :  { %v626_v29 = vmax.f32 %v625_v28, 0.0 }
 0x27f   :  { %v627_v31 = vpack.c.bf16 %v626_v29, %v626_v29 }
 0x280   :  { %v558_v32 = vpop.f32.mrf.mxu3 }
 0x281   :  { %704 = vmatmul.bf16.vlgmr.msrb.gmra.mxu1 %v627_v31 }
 0x288   :  { %v815_v35 = vpop.f32.mrf.mxu3 }
 0x289   :  { %v816_v36 = vadd.f32 %v1372_v34, %v815_v35 }
 0x28b   :  { %v819_v37 = vmax.f32 %v816_v36, 0.0 }
 0x28d   :  { %v820_v38 = vpack.c.bf16 %v819_v37, %v819_v37 }
 0x28f   :  { %897 = vmatmul.bf16.vlgmr.msra.gmra.mxu0 %v820_v38 }
 0x290   :  { %v817_v39 = vpop.f32.mrf.mxu3 }
 0x2fe   :  { %v705_v48 = vpop.f32.mrf.mxu1 }
 0x2ff   :  { %v706_v49 = vadd.f32 %v1373_v47, %v705_v48 }
 0x301   :  { %v709_v50 = vmax.f32 %v706_v49, 0.0 }
 0x303   :  { %v710_v51 = vpack.c.bf16 %v709_v50, %v709_v50 }
 0x305   :  { %787 = vmatmul.bf16.vlgmr.msrb.gmra.mxu2 %v710_v51 }
 0x306   :  { %v707_v52 = vpop.f32.mrf.mxu1 }
 0x30c   :  { %v898_v54 = vpop.f32.mrf.mxu0 }
 0x30d   :  { %v899_v55 = vadd.f32 %v1374_v53, %v898_v54 }
 0x30f   :  { %v902_v56 = vmax.f32 %v899_v55, 0.0 }
 0x311   :  { %v903_v57 = vpack.c.bf16 %v902_v56, %v902_v56 }
 0x313   :  { %980 = vmatmul.bf16.vlgmr.msra.gmra.mxu3 %v903_v57 }
 0x314   :  { %v900_v58 = vpop.f32.mrf.mxu0 }
 0x388   :  { %v788_v60 = vpop.f32.mrf.mxu2 }
 0x389   :  { %v789_v61 = vadd.f32 %v1375_v59, %v788_v60 }
 0x38b   :  { %792 = vst [vmem:[#allocation23] sm:$0xff] %v789_v61 }
 0x38c   :  { %1007 = dma.vmem_to_hbm [thread:$0]  %s1003_s0, 128, %s1005_s28, [#allocation24]  }
 0x390   :  { %v790_v62 = vpop.f32.mrf.mxu2 }
 0x396   :  { %v981_v0 = vpop.f32.mrf.mxu3 }
 0x397   :  { %v982_v1 = vadd.f32 %v1376_v63, %v981_v0 }
 0x399   :  { %985 = vst [vmem:[#allocation22] sm:$0xff] %v982_v1 }
 0x39a   :  { %996 = dma.vmem_to_hbm [thread:$0]  %s992_s20, 128, %s994_s22, [#allocation4]  }
 0x39e   :  { %v983_v2 = vpop.f32.mrf.mxu3 }
 0x39f   :  { %1727 = dma.done.wait [#allocation4], 128  }
 0x3a0   :  { %1728 = vsyncadd [#allocation4], 4294967168 }
 0x3a1   :  { %1729 = dma.done.wait [#allocation24], 128  }
 0x3a2   :  { %1730 = vsyncadd [#allocation24], 4294967168 }
 0x3a3   :  { %1016 = vsyncpa [#allocation3], 1 }
 0x3a4   :  { %1017 = vsyncpa [#allocation6], 1 }
 0x3a5   :  { %1018 = vsyncpa [#allocation9], 1 }
 0x3a6   :  { %1019 = vsyncpa [#allocation12], 1 }
 0x3a7   :  { %1020 = vsyncpa [#allocation15], 1 }
 0x3a8   :  { %1021 = vsyncpa [#allocation18], 1 }
 0x3a9   :  { %1022 = vsyncpa [#allocation21], 1 }
 0x3aa   :  { %1023 = vsyncpa [#allocation4], 1 }
 0x3ab   :  { %1024 = vsyncpa [#allocation24], 1 }

</bundles_post_ra>
